<compile_context>
chip_gen: v7x
topology: tpu7x:2x2x1
jax: 0.10.0
libtpu: 0.0.40
codegen_flags: <defaults>
</compile_context>

<pallas_src>
import functools

import jax
import jax.numpy as jnp
import numpy as np
from jax.experimental import pallas as pl
from jax.experimental.pallas import tpu as pltpu

LEAKY_SLOPE = 0.1
MXU_CHANNEL_THRESHOLD = 8              # C <= 8  -> sublane-dense VPU path
                                       # C >  8  -> (C, T) MXU path
VMEM_BUDGET_BYTES = 28 * 1024 * 1024   # target working set for blocks + temps
VMEM_LIMIT_HEADROOM = 16 * 1024 * 1024
VMEM_LIMIT_CAP = 48 * 1024 * 1024      # stays below v7x's 64 MiB physical VMEM


def _cdiv(a, b):
    return -(-a // b)


def _round_up(a, m):
    return _cdiv(a, m) * m


def _lrelu(t):
    return jnp.where(t >= 0.0, t, LEAKY_SLOPE * t)


# ---------------------------------------------------------------------------
# Tile planning (VMEM-budget derived, >=2 grid steps for v7x megacore)
# ---------------------------------------------------------------------------
def _plan_sublane_tiles(L, C, n_streams, n_batch, n_tmp):
    """Plan (S_tile, S_pad, nt, vmem_limit) for the (1, C, S, 128) layout."""
    S_full = _round_up(max(_cdiv(L, 128), 1), 8)          # sublane rows, mult of 8
    row_bytes = C * 128 * 4
    per_row = (2 * n_streams + n_tmp) * row_bytes         # dbl-buffered streams + temps
    S_budget = max(8, (VMEM_BUDGET_BYTES // per_row) // 8 * 8)
    S_tile = min(S_full, S_budget)
    nt = _cdiv(S_full, S_tile)
    if n_batch * nt < 2 and S_full > 8:                   # keep both v7x TCs busy
        S_tile = _round_up(_cdiv(S_full, 2), 8)
        nt = _cdiv(S_full, S_tile)
    S_pad = nt * S_tile                                   # grid divides exactly
    vmem_limit = int(min(per_row * S_tile + VMEM_LIMIT_HEADROOM, VMEM_LIMIT_CAP))
    return S_tile, S_pad, nt, vmem_limit


def _plan_lane_tiles(L, C, n_streams, n_batch, n_tmp):
    """Plan (T, L_pad, nt, vmem_limit) for the (1, C, T) MXU layout."""
    T_full = _round_up(max(L, 1), 128)
    lane_bytes = C * 4
    per_lane = (2 * n_streams + n_tmp) * lane_bytes
    T_budget = max(128, (VMEM_BUDGET_BYTES // per_lane) // 128 * 128)
    T = min(T_full, T_budget)
    nt = _cdiv(T_full, T)
    if n_batch * nt < 2 and T_full > 128:
        T = _round_up(_cdiv(T_full, 2), 128)
        nt = _cdiv(T_full, T)
    L_pad = nt * T
    vmem_limit = int(min(per_lane * T + VMEM_LIMIT_HEADROOM, VMEM_LIMIT_CAP))
    return T, L_pad, nt, vmem_limit


# ---------------------------------------------------------------------------
# Kernels — small-C sublane-dense path (blocks (1, C, S, 128), weights in SMEM)
# ---------------------------------------------------------------------------
def _conv1x1_kernel_small(x_ref, w_ref, b_ref, o_ref, *, C):
    # x_ref block: (1, C, S, 128).  w_ref: SMEM (C, C).  b_ref: SMEM (C,).
    xs = [x_ref[0, ci] for ci in range(C)]                # C x (S, 128)
    for co in range(C):
        acc = xs[0] * w_ref[co, 0]
        for ci in range(1, C):
            acc = acc + xs[ci] * w_ref[co, ci]
        o_ref[0, co] = acc + b_ref[co]


def _freq_kernel_small(re_ref, im_ref, w_ref, b_ref, re_o_ref, im_o_ref, *, C):
    # Blocks: (1, C, S, 128).  w_ref: SMEM (4*C, C).  b_ref: SMEM (4*C,).
    def mix(xs, k):
        out = []
        for co in range(C):
            row = k * C + co
            acc = xs[0] * w_ref[row, 0]
            for ci in range(1, C):
                acc = acc + xs[ci] * w_ref[row, ci]
            out.append(acc + b_ref[row])
        return out

    amp, pha = [], []
    for c in range(C):
        re_c = re_ref[0, c]
        im_c = im_ref[0, c]
        amp.append(jnp.sqrt(re_c * re_c + im_c * im_c))    # |x_freq|
        pha.append(jnp.arctan2(im_c, re_c))                # angle(x_freq)

    # process1 (amplitude): conv -> LeakyReLU(0.1) -> conv
    a = mix([_lrelu(t) for t in mix(amp, 0)], 1)
    # process2 (phase): conv -> LeakyReLU(0.1) -> conv
    p = mix([_lrelu(t) for t in mix(pha, 2)], 3)

    # torch.polar(a, p) = a * (cos(p) + i sin(p))
    for c in range(C):
        re_o_ref[0, c] = a[c] * jnp.cos(p[c])
        im_o_ref[0, c] = a[c] * jnp.sin(p[c])


# ---------------------------------------------------------------------------
# Kernels — large-C MXU path (blocks (1, C, T), weights in VMEM)
# ---------------------------------------------------------------------------
def _conv1x1_kernel_mxu(x_ref, w_ref, b_ref, o_ref):
    o_ref[0] = (jnp.dot(w_ref[...], x_ref[0], preferred_element_type=jnp.float32)
                + b_ref[...])


def _freq_kernel_mxu(re_ref, im_ref, w_ref, b_ref, re_o_ref, im_o_ref):
    re = re_ref[0]
    im = im_ref[0]
    w = w_ref[...]
    b = b_ref[...]

    amp = jnp.sqrt(re * re + im * im)
    pha = jnp.arctan2(im, re)

    def mix(t, k):
        return jnp.dot(w[k], t, preferred_element_type=jnp.float32) + b[k]

    a = mix(_lrelu(mix(amp, 0)), 1)
    p = mix(_lrelu(mix(pha, 2)), 3)

    re_o_ref[0] = a * jnp.cos(p)
    im_o_ref[0] = a * jnp.sin(p)


# ---------------------------------------------------------------------------
# Pallas wrappers
# ---------------------------------------------------------------------------
def _conv1x1(x3, w, b):
    """x3: (N, C, L) f32,  w: (C_out, C_in),  b: (C_out,)  ->  (N, C, L)."""
    N, C, L = x3.shape

    if C <= MXU_CHANNEL_THRESHOLD:
        S_tile, S_pad, nt, vmem = _plan_sublane_tiles(L, C, n_streams=2,
                                                      n_batch=N, n_tmp=4)
        Lp = S_pad * 128
        x4 = jnp.pad(x3, ((0, 0), (0, 0), (0, Lp - L))).reshape(N, C, S_pad, 128)
        blk = pl.BlockSpec((1, C, S_tile, 128), lambda n, i: (n, 0, i, 0))
        smem = pl.BlockSpec(memory_space=pltpu.MemorySpace.SMEM)
        out = pl.pallas_call(
            functools.partial(_conv1x1_kernel_small, C=C),
            out_shape=jax.ShapeDtypeStruct((N, C, S_pad, 128), jnp.float32),
            grid=(N, nt),
            in_specs=[blk, smem, smem],
            out_specs=blk,
            compiler_params=pltpu.CompilerParams(
                dimension_semantics=("parallel", "parallel"),
                vmem_limit_bytes=vmem),
            cost_estimate=pl.CostEstimate(
                flops=2 * N * Lp * C * C,
                transcendentals=0,
                bytes_accessed=2 * N * Lp * C * 4 + (C * C + C) * 4),
        )(x4, w, b)
        return out.reshape(N, C, Lp)[:, :, :L]

    # Large C: lane-dense (1, C, T) blocks + MXU channel mix.
    T, L_pad, nt, vmem = _plan_lane_tiles(L, C, n_streams=2, n_batch=N, n_tmp=4)
    x3p = jnp.pad(x3, ((0, 0), (0, 0), (0, L_pad - L)))
    blk = pl.BlockSpec((1, C, T), lambda n, i: (n, 0, i))
    out = pl.pallas_call(
        _conv1x1_kernel_mxu,
        out_shape=jax.ShapeDtypeStruct((N, C, L_pad), jnp.float32),
        grid=(N, nt),
        in_specs=[blk,
                  pl.BlockSpec((C, C), lambda n, i: (0, 0)),   # VMEM-resident
                  pl.BlockSpec((C, 1), lambda n, i: (0, 0))],  # VMEM-resident
        out_specs=blk,
        compiler_params=pltpu.CompilerParams(
            dimension_semantics=("parallel", "parallel"),
            vmem_limit_bytes=vmem),
        cost_estimate=pl.CostEstimate(
            flops=2 * N * L_pad * C * C,
            transcendentals=0,
            bytes_accessed=2 * N * L_pad * C * 4 + (C * C + C) * 4),
    )(x3p, w, b.reshape(C, 1))
    return out[:, :, :L]


def _freq_process(re3, im3, w_stack, b_stack):
    """re3/im3: (N, C, Lr) f32,  w_stack: (4, C, C),  b_stack: (4, C)."""
    N, C, Lr = re3.shape

    if C <= MXU_CHANNEL_THRESHOLD:
        S_tile, S_pad, nt, vmem = _plan_sublane_tiles(Lr, C, n_streams=4,
                                                      n_batch=N, n_tmp=10)
        Lp = S_pad * 128
        pad = ((0, 0), (0, 0), (0, Lp - Lr))
        re4 = jnp.pad(re3, pad).reshape(N, C, S_pad, 128)
        im4 = jnp.pad(im3, pad).reshape(N, C, S_pad, 128)
        blk = pl.BlockSpec((1, C, S_tile, 128), lambda n, i: (n, 0, i, 0))
        smem = pl.BlockSpec(memory_space=pltpu.MemorySpace.SMEM)
        re_o, im_o = pl.pallas_call(
            functools.partial(_freq_kernel_small, C=C),
            out_shape=(jax.ShapeDtypeStruct((N, C, S_pad, 128), jnp.float32),
                       jax.ShapeDtypeStruct((N, C, S_pad, 128), jnp.float32)),
            grid=(N, nt),
            in_specs=[blk, blk, smem, smem],
            out_specs=(blk, blk),
            compiler_params=pltpu.CompilerParams(
                dimension_semantics=("parallel", "parallel"),
                vmem_limit_bytes=vmem),
            cost_estimate=pl.CostEstimate(
                flops=8 * N * Lp * C * C,               # 4 channel-mix convs
                transcendentals=4 * N * Lp * C,         # sqrt, atan2, cos, sin
                bytes_accessed=4 * N * Lp * C * 4),
        )(re4, im4, w_stack.reshape(4 * C, C), b_stack.reshape(4 * C))
        re_o = re_o.reshape(N, C, Lp)[:, :, :Lr]
        im_o = im_o.reshape(N, C, Lp)[:, :, :Lr]
        return re_o, im_o

    # Large C: lane-dense (1, C, T) blocks + MXU channel mixes.
    T, L_pad, nt, vmem = _plan_lane_tiles(Lr, C, n_streams=4, n_batch=N, n_tmp=10)
    pad = ((0, 0), (0, 0), (0, L_pad - Lr))
    re3p = jnp.pad(re3, pad)
    im3p = jnp.pad(im3, pad)
    blk = pl.BlockSpec((1, C, T), lambda n, i: (n, 0, i))
    re_o, im_o = pl.pallas_call(
        _freq_kernel_mxu,
        out_shape=(jax.ShapeDtypeStruct((N, C, L_pad), jnp.float32),
                   jax.ShapeDtypeStruct((N, C, L_pad), jnp.float32)),
        grid=(N, nt),
        in_specs=[blk, blk,
                  pl.BlockSpec((4, C, C), lambda n, i: (0, 0, 0)),
                  pl.BlockSpec((4, C, 1), lambda n, i: (0, 0, 0))],
        out_specs=(blk, blk),
        compiler_params=pltpu.CompilerParams(
            dimension_semantics=("parallel", "parallel"),
            vmem_limit_bytes=vmem),
        cost_estimate=pl.CostEstimate(
            flops=8 * N * L_pad * C * C,
            transcendentals=4 * N * L_pad * C,
            bytes_accessed=4 * N * L_pad * C * 4),
    )(re3p, im3p, w_stack, b_stack.reshape(4, C, 1))
    return re_o[:, :, :Lr], im_o[:, :, :Lr]


# ---------------------------------------------------------------------------
# FreBlock forward (Pallas kernels + JAX FFT glue)
# ---------------------------------------------------------------------------
def fre_block_forward(x, params):
    N, C, H, W = x.shape
    x = x.astype(jnp.float32)

    # fpre: 1x1 conv on NCHW; pure memory-bound channel mix in Pallas.
    y = _conv1x1(x.reshape(N, C, H * W), params["w_fpre"], params["b_fpre"])
    y = y.reshape(N, C, H, W)

    # TODO(synk): rfft2 / irfft2 have no Pallas primitive; stay in plain JAX.
    xf = jnp.fft.rfft2(y, norm="backward")            # (N, C, H, Wr) complex64
    Wr = xf.shape[-1]
    Lr = H * Wr
    # TODO(synk): re/im split & merge are two extra XLA HBM passes; folding them
    # into the kernel via a bitcast-interleaved layout needs in-kernel lane
    # de-interleave (strided lane loads / cross-lane compaction) that either
    # doubles the VALU/EUP work or risks unsupported codegen, so it is skipped.
    re = jnp.real(xf).reshape(N, C, Lr)
    im = jnp.imag(xf).reshape(N, C, Lr)

    # abs/angle + process1/process2 + polar, fused in one tiled Pallas kernel.
    re_o, im_o = _freq_process(re, im, params["w_freq"], params["b_freq"])
    xf_o = jax.lax.complex(re_o, im_o).reshape(N, C, H, Wr)

    x_out = jnp.fft.irfft2(xf_o, s=(H, W), norm="backward")

    # Residual add left to XLA so it fuses with the irfft2 epilogue.
    return x_out + x


# ---------------------------------------------------------------------------
# Deterministic parameter init (shapes mirror nn.Conv2d(nc, nc, 1, 1, 0))
# ---------------------------------------------------------------------------
def init_params(key, nc):
    keys = jax.random.split(key, 10)

    def conv_wb(kw, kb):
        w = jax.random.normal(kw, (nc, nc), jnp.float32) / jnp.sqrt(nc)  # (c_out, c_in)
        b = jax.random.normal(kb, (nc,), jnp.float32) * 0.05
        return w, b

    w_fpre, b_fpre = conv_wb(keys[0], keys[1])
    w1a, b1a = conv_wb(keys[2], keys[3])
    w1b, b1b = conv_wb(keys[4], keys[5])
    w2a, b2a = conv_wb(keys[6], keys[7])
    w2b, b2b = conv_wb(keys[8], keys[9])
    return dict(
        w_fpre=w_fpre, b_fpre=b_fpre,
        # Stacked versions used by the fused Pallas kernel.
        w_freq=jnp.stack([w1a, w1b, w2a, w2b]),    # (4, C, C)
        b_freq=jnp.stack([b1a, b1b, b2a, b2b]),    # (4, C)
        # Individual copies kept for the pure-JAX reference.
        w1a=w1a, b1a=b1a, w1b=w1b, b1b=b1b,
        w2a=w2a, b2a=b2a, w2b=w2b, b2b=b2b,
    )


# ---------------------------------------------------------------------------
# Pure-JAX reference (numerical sanity check)
# ---------------------------------------------------------------------------
def ref_forward(x, params):
    N, C, H, W = x.shape
    hp = jax.lax.Precision.HIGHEST

    def conv(t, w, b):  # t: (N, C, h, w), w: (C_out, C_in), b: (C_out,)
        return jnp.einsum("oi,nihw->nohw", w, t, precision=hp) + b[None, :, None, None]

    y = conv(x, params["w_fpre"], params["b_fpre"])
    xf = jnp.fft.rfft2(y, norm="backward")
    amp = jnp.abs(xf)
    pha = jnp.angle(xf)
    amp = conv(_lrelu(conv(amp, params["w1a"], params["b1a"])), params["w1b"], params["b1b"])
    pha = conv(_lrelu(conv(pha, params["w2a"], params["b2a"])), params["w2b"], params["b2b"])
    x_out = jnp.fft.irfft2(amp * jnp.exp(1j * pha), s=(H, W), norm="backward")
    return x_out + x


# ---------------------------------------------------------------------------
if __name__ == "__main__":
    nc = 4
    N, H, W = 2, 16, 16

    key = jax.random.PRNGKey(0)
    kx, kp = jax.random.split(key)
    x = jax.random.normal(kx, (N, nc, H, W), jnp.float32)
    params = init_params(kp, nc)

    fwd = jax.jit(fre_block_forward)
    out = jax.block_until_ready(fwd(x, params))

    ref = jax.block_until_ready(ref_forward(x, params))
    np.testing.assert_allclose(np.asarray(out), np.asarray(ref), rtol=2e-2, atol=2e-2)

    print("KERNEL_OK")
</pallas_src>

<mosaic_0001>
module attributes {stable_mosaic.version = 11 : i64} {
  func.func @_conv1x1_kernel_small(%arg0: i32, %arg1: i32, %arg2: memref<1x4x8x128xf32, #tpu.memory_space<vmem>>, %arg3: memref<4x4xf32, #tpu.memory_space<smem>>, %arg4: memref<4xf32, #tpu.memory_space<smem>>, %arg5: memref<1x4x8x128xf32, #tpu.memory_space<vmem>>) attributes {dimension_semantics = [#tpu.dimension_semantics<parallel>, #tpu.dimension_semantics<parallel>], iteration_bounds = array<i64: 2, 1>, scalar_prefetch = 0 : i64, scratch_operands = 0 : i64, tpu.core_type = #tpu.core_type<tc>, window_params = [{transform_indices = @transform_0, window_bounds = array<i64: 1, 4, 8, 128>}, {transform_indices = @transform_1, window_bounds = array<i64: 4, 4>}, {transform_indices = @transform_2, window_bounds = array<i64: 4>}, {transform_indices = @transform_3, window_bounds = array<i64: 1, 4, 8, 128>}]} {
    %c0 = arith.constant 0 : index
    %c0_0 = arith.constant 0 : index
    %c0_1 = arith.constant 0 : index
    %c0_2 = arith.constant 0 : index
    %0 = vector.load %arg2[%c0, %c0_0, %c0_1, %c0_2] : memref<1x4x8x128xf32, #tpu.memory_space<vmem>>, vector<1x1x8x128xf32>
    %1 = vector.shape_cast %0 : vector<1x1x8x128xf32> to vector<8x128xf32>
    %c0_3 = arith.constant 0 : index
    %c1 = arith.constant 1 : index
    %c0_4 = arith.constant 0 : index
    %c0_5 = arith.constant 0 : index
    %2 = vector.load %arg2[%c0_3, %c1, %c0_4, %c0_5] : memref<1x4x8x128xf32, #tpu.memory_space<vmem>>, vector<1x1x8x128xf32>
    %3 = vector.shape_cast %2 : vector<1x1x8x128xf32> to vector<8x128xf32>
    %c0_6 = arith.constant 0 : index
    %c2 = arith.constant 2 : index
    %c0_7 = arith.constant 0 : index
    %c0_8 = arith.constant 0 : index
    %4 = vector.load %arg2[%c0_6, %c2, %c0_7, %c0_8] : memref<1x4x8x128xf32, #tpu.memory_space<vmem>>, vector<1x1x8x128xf32>
    %5 = vector.shape_cast %4 : vector<1x1x8x128xf32> to vector<8x128xf32>
    %c0_9 = arith.constant 0 : index
    %c3 = arith.constant 3 : index
    %c0_10 = arith.constant 0 : index
    %c0_11 = arith.constant 0 : index
    %6 = vector.load %arg2[%c0_9, %c3, %c0_10, %c0_11] : memref<1x4x8x128xf32, #tpu.memory_space<vmem>>, vector<1x1x8x128xf32>
    %7 = vector.shape_cast %6 : vector<1x1x8x128xf32> to vector<8x128xf32>
    %c0_12 = arith.constant 0 : index
    %c0_13 = arith.constant 0 : index
    %8 = memref.load %arg3[%c0_12, %c0_13] : memref<4x4xf32, #tpu.memory_space<smem>>
    %9 = vector.broadcast %8 : f32 to vector<8x128xf32>
    %10 = arith.mulf %1, %9 : vector<8x128xf32>
    %c0_14 = arith.constant 0 : index
    %c1_15 = arith.constant 1 : index
    %11 = memref.load %arg3[%c0_14, %c1_15] : memref<4x4xf32, #tpu.memory_space<smem>>
    %12 = vector.broadcast %11 : f32 to vector<8x128xf32>
    %13 = arith.mulf %3, %12 : vector<8x128xf32>
    %14 = arith.addf %10, %13 : vector<8x128xf32>
    %c0_16 = arith.constant 0 : index
    %c2_17 = arith.constant 2 : index
    %15 = memref.load %arg3[%c0_16, %c2_17] : memref<4x4xf32, #tpu.memory_space<smem>>
    %16 = vector.broadcast %15 : f32 to vector<8x128xf32>
    %17 = arith.mulf %5, %16 : vector<8x128xf32>
    %18 = arith.addf %14, %17 : vector<8x128xf32>
    %c0_18 = arith.constant 0 : index
    %c3_19 = arith.constant 3 : index
    %19 = memref.load %arg3[%c0_18, %c3_19] : memref<4x4xf32, #tpu.memory_space<smem>>
    %20 = vector.broadcast %19 : f32 to vector<8x128xf32>
    %21 = arith.mulf %7, %20 : vector<8x128xf32>
    %22 = arith.addf %18, %21 : vector<8x128xf32>
    %c0_20 = arith.constant 0 : index
    %23 = memref.load %arg4[%c0_20] : memref<4xf32, #tpu.memory_space<smem>>
    %24 = vector.broadcast %23 : f32 to vector<8x128xf32>
    %25 = arith.addf %22, %24 : vector<8x128xf32>
    %c0_21 = arith.constant 0 : index
    %c0_22 = arith.constant 0 : index
    %c0_23 = arith.constant 0 : index
    %c0_24 = arith.constant 0 : index
    %26 = vector.load %arg5[%c0_21, %c0_22, %c0_23, %c0_24] : memref<1x4x8x128xf32, #tpu.memory_space<vmem>>, vector<1x1x8x128xf32>
    %27 = vector.shape_cast %26 : vector<1x1x8x128xf32> to vector<8x128xf32>
    %28 = vector.shape_cast %25 : vector<8x128xf32> to vector<1x1x8x128xf32>
    tpu.vector_store %arg5[%c0_21, %c0_22, %c0_23, %c0_24], %28 {strides = array<i32>} : memref<1x4x8x128xf32, #tpu.memory_space<vmem>>, vector<1x1x8x128xf32>,
    %c1_25 = arith.constant 1 : index
    %c0_26 = arith.constant 0 : index
    %29 = memref.load %arg3[%c1_25, %c0_26] : memref<4x4xf32, #tpu.memory_space<smem>>
    %30 = vector.broadcast %29 : f32 to vector<8x128xf32>
    %31 = arith.mulf %1, %30 : vector<8x128xf32>
    %c1_27 = arith.constant 1 : index
    %c1_28 = arith.constant 1 : index
    %32 = memref.load %arg3[%c1_27, %c1_28] : memref<4x4xf32, #tpu.memory_space<smem>>
    %33 = vector.broadcast %32 : f32 to vector<8x128xf32>
    %34 = arith.mulf %3, %33 : vector<8x128xf32>
    %35 = arith.addf %31, %34 : vector<8x128xf32>
    %c1_29 = arith.constant 1 : index
    %c2_30 = arith.constant 2 : index
    %36 = memref.load %arg3[%c1_29, %c2_30] : memref<4x4xf32, #tpu.memory_space<smem>>
    %37 = vector.broadcast %36 : f32 to vector<8x128xf32>
    %38 = arith.mulf %5, %37 : vector<8x128xf32>
    %39 = arith.addf %35, %38 : vector<8x128xf32>
    %c1_31 = arith.constant 1 : index
    %c3_32 = arith.constant 3 : index
    %40 = memref.load %arg3[%c1_31, %c3_32] : memref<4x4xf32, #tpu.memory_space<smem>>
    %41 = vector.broadcast %40 : f32 to vector<8x128xf32>
    %42 = arith.mulf %7, %41 : vector<8x128xf32>
    %43 = arith.addf %39, %42 : vector<8x128xf32>
    %c1_33 = arith.constant 1 : index
    %44 = memref.load %arg4[%c1_33] : memref<4xf32, #tpu.memory_space<smem>>
    %45 = vector.broadcast %44 : f32 to vector<8x128xf32>
    %46 = arith.addf %43, %45 : vector<8x128xf32>
    %c0_34 = arith.constant 0 : index
    %c1_35 = arith.constant 1 : index
    %c0_36 = arith.constant 0 : index
    %c0_37 = arith.constant 0 : index
    %47 = vector.load %arg5[%c0_34, %c1_35, %c0_36, %c0_37] : memref<1x4x8x128xf32, #tpu.memory_space<vmem>>, vector<1x1x8x128xf32>
    %48 = vector.shape_cast %47 : vector<1x1x8x128xf32> to vector<8x128xf32>
    %49 = vector.shape_cast %46 : vector<8x128xf32> to vector<1x1x8x128xf32>
    tpu.vector_store %arg5[%c0_34, %c1_35, %c0_36, %c0_37], %49 {strides = array<i32>} : memref<1x4x8x128xf32, #tpu.memory_space<vmem>>, vector<1x1x8x128xf32>,
    %c2_38 = arith.constant 2 : index
    %c0_39 = arith.constant 0 : index
    %50 = memref.load %arg3[%c2_38, %c0_39] : memref<4x4xf32, #tpu.memory_space<smem>>
    %51 = vector.broadcast %50 : f32 to vector<8x128xf32>
    %52 = arith.mulf %1, %51 : vector<8x128xf32>
    %c2_40 = arith.constant 2 : index
    %c1_41 = arith.constant 1 : index
    %53 = memref.load %arg3[%c2_40, %c1_41] : memref<4x4xf32, #tpu.memory_space<smem>>
    %54 = vector.broadcast %53 : f32 to vector<8x128xf32>
    %55 = arith.mulf %3, %54 : vector<8x128xf32>
    %56 = arith.addf %52, %55 : vector<8x128xf32>
    %c2_42 = arith.constant 2 : index
    %c2_43 = arith.constant 2 : index
    %57 = memref.load %arg3[%c2_42, %c2_43] : memref<4x4xf32, #tpu.memory_space<smem>>
    %58 = vector.broadcast %57 : f32 to vector<8x128xf32>
    %59 = arith.mulf %5, %58 : vector<8x128xf32>
    %60 = arith.addf %56, %59 : vector<8x128xf32>
    %c2_44 = arith.constant 2 : index
    %c3_45 = arith.constant 3 : index
    %61 = memref.load %arg3[%c2_44, %c3_45] : memref<4x4xf32, #tpu.memory_space<smem>>
    %62 = vector.broadcast %61 : f32 to vector<8x128xf32>
    %63 = arith.mulf %7, %62 : vector<8x128xf32>
    %64 = arith.addf %60, %63 : vector<8x128xf32>
    %c2_46 = arith.constant 2 : index
    %65 = memref.load %arg4[%c2_46] : memref<4xf32, #tpu.memory_space<smem>>
    %66 = vector.broadcast %65 : f32 to vector<8x128xf32>
    %67 = arith.addf %64, %66 : vector<8x128xf32>
    %c0_47 = arith.constant 0 : index
    %c2_48 = arith.constant 2 : index
    %c0_49 = arith.constant 0 : index
    %c0_50 = arith.constant 0 : index
    %68 = vector.load %arg5[%c0_47, %c2_48, %c0_49, %c0_50] : memref<1x4x8x128xf32, #tpu.memory_space<vmem>>, vector<1x1x8x128xf32>
    %69 = vector.shape_cast %68 : vector<1x1x8x128xf32> to vector<8x128xf32>
    %70 = vector.shape_cast %67 : vector<8x128xf32> to vector<1x1x8x128xf32>
    tpu.vector_store %arg5[%c0_47, %c2_48, %c0_49, %c0_50], %70 {strides = array<i32>} : memref<1x4x8x128xf32, #tpu.memory_space<vmem>>, vector<1x1x8x128xf32>,
    %c3_51 = arith.constant 3 : index
    %c0_52 = arith.constant 0 : index
    %71 = memref.load %arg3[%c3_51, %c0_52] : memref<4x4xf32, #tpu.memory_space<smem>>
    %72 = vector.broadcast %71 : f32 to vector<8x128xf32>
    %73 = arith.mulf %1, %72 : vector<8x128xf32>
    %c3_53 = arith.constant 3 : index
    %c1_54 = arith.constant 1 : index
    %74 = memref.load %arg3[%c3_53, %c1_54] : memref<4x4xf32, #tpu.memory_space<smem>>
    %75 = vector.broadcast %74 : f32 to vector<8x128xf32>
    %76 = arith.mulf %3, %75 : vector<8x128xf32>
    %77 = arith.addf %73, %76 : vector<8x128xf32>
    %c3_55 = arith.constant 3 : index
    %c2_56 = arith.constant 2 : index
    %78 = memref.load %arg3[%c3_55, %c2_56] : memref<4x4xf32, #tpu.memory_space<smem>>
    %79 = vector.broadcast %78 : f32 to vector<8x128xf32>
    %80 = arith.mulf %5, %79 : vector<8x128xf32>
    %81 = arith.addf %77, %80 : vector<8x128xf32>
    %c3_57 = arith.constant 3 : index
    %c3_58 = arith.constant 3 : index
    %82 = memref.load %arg3[%c3_57, %c3_58] : memref<4x4xf32, #tpu.memory_space<smem>>
    %83 = vector.broadcast %82 : f32 to vector<8x128xf32>
    %84 = arith.mulf %7, %83 : vector<8x128xf32>
    %85 = arith.addf %81, %84 : vector<8x128xf32>
    %c3_59 = arith.constant 3 : index
    %86 = memref.load %arg4[%c3_59] : memref<4xf32, #tpu.memory_space<smem>>
    %87 = vector.broadcast %86 : f32 to vector<8x128xf32>
    %88 = arith.addf %85, %87 : vector<8x128xf32>
    %c0_60 = arith.constant 0 : index
    %c3_61 = arith.constant 3 : index
    %c0_62 = arith.constant 0 : index
    %c0_63 = arith.constant 0 : index
    %89 = vector.load %arg5[%c0_60, %c3_61, %c0_62, %c0_63] : memref<1x4x8x128xf32, #tpu.memory_space<vmem>>, vector<1x1x8x128xf32>
    %90 = vector.shape_cast %89 : vector<1x1x8x128xf32> to vector<8x128xf32>
    %91 = vector.shape_cast %88 : vector<8x128xf32> to vector<1x1x8x128xf32>
    tpu.vector_store %arg5[%c0_60, %c3_61, %c0_62, %c0_63], %91 {strides = array<i32>} : memref<1x4x8x128xf32, #tpu.memory_space<vmem>>, vector<1x1x8x128xf32>,
    return
  }
  func.func @transform_0(%arg0: i32, %arg1: i32) -> (i32, i32, i32, i32) {
    %c0_i32 = arith.constant 0 : i32
    %c0_i32_0 = arith.constant 0 : i32
    %c0_i32_1 = arith.constant 0 : i32
    return %arg0, %c0_i32, %arg1, %c0_i32_0 : i32, i32, i32, i32
  }
  func.func @transform_1(%arg0: i32, %arg1: i32) -> (i32, i32) {
    %c0_i32 = arith.constant 0 : i32
    %c0_i32_0 = arith.constant 0 : i32
    %c0_i32_1 = arith.constant 0 : i32
    return %c0_i32, %c0_i32_0 : i32, i32
  }
  func.func @transform_2(%arg0: i32, %arg1: i32) -> i32 {
    %c0_i32 = arith.constant 0 : i32
    %c0_i32_0 = arith.constant 0 : i32
    return %c0_i32 : i32
  }
  func.func @transform_3(%arg0: i32, %arg1: i32) -> (i32, i32, i32, i32) {
    %c0_i32 = arith.constant 0 : i32
    %c0_i32_0 = arith.constant 0 : i32
    %c0_i32_1 = arith.constant 0 : i32
    return %arg0, %c0_i32, %arg1, %c0_i32_0 : i32, i32, i32, i32
  }
}

module attributes {stable_mosaic.version = 11 : i64} {
  func.func @_freq_kernel_small(%arg0: i32, %arg1: i32, %arg2: memref<1x4x8x128xf32, #tpu.memory_space<vmem>>, %arg3: memref<1x4x8x128xf32, #tpu.memory_space<vmem>>, %arg4: memref<16x4xf32, #tpu.memory_space<smem>>, %arg5: memref<16xf32, #tpu.memory_space<smem>>, %arg6: memref<1x4x8x128xf32, #tpu.memory_space<vmem>>, %arg7: memref<1x4x8x128xf32, #tpu.memory_space<vmem>>) attributes {dimension_semantics = [#tpu.dimension_semantics<parallel>, #tpu.dimension_semantics<parallel>], iteration_bounds = array<i64: 2, 1>, scalar_prefetch = 0 : i64, scratch_operands = 0 : i64, tpu.core_type = #tpu.core_type<tc>, window_params = [{transform_indices = @transform_0, window_bounds = array<i64: 1, 4, 8, 128>}, {transform_indices = @transform_1, window_bounds = array<i64: 1, 4, 8, 128>}, {transform_indices = @transform_2, window_bounds = array<i64: 16, 4>}, {transform_indices = @transform_3, window_bounds = array<i64: 16>}, {transform_indices = @transform_4, window_bounds = array<i64: 1, 4, 8, 128>}, {transform_indices = @transform_5, window_bounds = array<i64: 1, 4, 8, 128>}]} {
    %c0 = arith.constant 0 : index
    %c0_0 = arith.constant 0 : index
    %c0_1 = arith.constant 0 : index
    %c0_2 = arith.constant 0 : index
    %0 = vector.load %arg2[%c0, %c0_0, %c0_1, %c0_2] : memref<1x4x8x128xf32, #tpu.memory_space<vmem>>, vector<1x1x8x128xf32>
    %1 = vector.shape_cast %0 : vector<1x1x8x128xf32> to vector<8x128xf32>
    %c0_3 = arith.constant 0 : index
    %c0_4 = arith.constant 0 : index
    %c0_5 = arith.constant 0 : index
    %c0_6 = arith.constant 0 : index
    %2 = vector.load %arg3[%c0_3, %c0_4, %c0_5, %c0_6] : memref<1x4x8x128xf32, #tpu.memory_space<vmem>>, vector<1x1x8x128xf32>
    %3 = vector.shape_cast %2 : vector<1x1x8x128xf32> to vector<8x128xf32>
    %4 = arith.mulf %1, %1 : vector<8x128xf32>
    %5 = arith.mulf %3, %3 : vector<8x128xf32>
    %6 = arith.addf %4, %5 : vector<8x128xf32>
    %7 = math.sqrt %6 : vector<8x128xf32>
    %8 = math.atan2 %3, %1 : vector<8x128xf32>
    %c0_7 = arith.constant 0 : index
    %c1 = arith.constant 1 : index
    %c0_8 = arith.constant 0 : index
    %c0_9 = arith.constant 0 : index
    %9 = vector.load %arg2[%c0_7, %c1, %c0_8, %c0_9] : memref<1x4x8x128xf32, #tpu.memory_space<vmem>>, vector<1x1x8x128xf32>
    %10 = vector.shape_cast %9 : vector<1x1x8x128xf32> to vector<8x128xf32>
    %c0_10 = arith.constant 0 : index
    %c1_11 = arith.constant 1 : index
    %c0_12 = arith.constant 0 : index
    %c0_13 = arith.constant 0 : index
    %11 = vector.load %arg3[%c0_10, %c1_11, %c0_12, %c0_13] : memref<1x4x8x128xf32, #tpu.memory_space<vmem>>, vector<1x1x8x128xf32>
    %12 = vector.shape_cast %11 : vector<1x1x8x128xf32> to vector<8x128xf32>
    %13 = arith.mulf %10, %10 : vector<8x128xf32>
    %14 = arith.mulf %12, %12 : vector<8x128xf32>
    %15 = arith.addf %13, %14 : vector<8x128xf32>
    %16 = math.sqrt %15 : vector<8x128xf32>
    %17 = math.atan2 %12, %10 : vector<8x128xf32>
    %c0_14 = arith.constant 0 : index
    %c2 = arith.constant 2 : index
    %c0_15 = arith.constant 0 : index
    %c0_16 = arith.constant 0 : index
    %18 = vector.load %arg2[%c0_14, %c2, %c0_15, %c0_16] : memref<1x4x8x128xf32, #tpu.memory_space<vmem>>, vector<1x1x8x128xf32>
    %19 = vector.shape_cast %18 : vector<1x1x8x128xf32> to vector<8x128xf32>
    %c0_17 = arith.constant 0 : index
    %c2_18 = arith.constant 2 : index
    %c0_19 = arith.constant 0 : index
    %c0_20 = arith.constant 0 : index
    %20 = vector.load %arg3[%c0_17, %c2_18, %c0_19, %c0_20] : memref<1x4x8x128xf32, #tpu.memory_space<vmem>>, vector<1x1x8x128xf32>
    %21 = vector.shape_cast %20 : vector<1x1x8x128xf32> to vector<8x128xf32>
    %22 = arith.mulf %19, %19 : vector<8x128xf32>
    %23 = arith.mulf %21, %21 : vector<8x128xf32>
    %24 = arith.addf %22, %23 : vector<8x128xf32>
    %25 = math.sqrt %24 : vector<8x128xf32>
    %26 = math.atan2 %21, %19 : vector<8x128xf32>
    %c0_21 = arith.constant 0 : index
    %c3 = arith.constant 3 : index
    %c0_22 = arith.constant 0 : index
    %c0_23 = arith.constant 0 : index
    %27 = vector.load %arg2[%c0_21, %c3, %c0_22, %c0_23] : memref<1x4x8x128xf32, #tpu.memory_space<vmem>>, vector<1x1x8x128xf32>
    %28 = vector.shape_cast %27 : vector<1x1x8x128xf32> to vector<8x128xf32>
    %c0_24 = arith.constant 0 : index
    %c3_25 = arith.constant 3 : index
    %c0_26 = arith.constant 0 : index
    %c0_27 = arith.constant 0 : index
    %29 = vector.load %arg3[%c0_24, %c3_25, %c0_26, %c0_27] : memref<1x4x8x128xf32, #tpu.memory_space<vmem>>, vector<1x1x8x128xf32>
    %30 = vector.shape_cast %29 : vector<1x1x8x128xf32> to vector<8x128xf32>
    %31 = arith.mulf %28, %28 : vector<8x128xf32>
    %32 = arith.mulf %30, %30 : vector<8x128xf32>
    %33 = arith.addf %31, %32 : vector<8x128xf32>
    %34 = math.sqrt %33 : vector<8x128xf32>
    %35 = math.atan2 %30, %28 : vector<8x128xf32>
    %c0_28 = arith.constant 0 : index
    %c0_29 = arith.constant 0 : index
    %36 = memref.load %arg4[%c0_28, %c0_29] : memref<16x4xf32, #tpu.memory_space<smem>>
    %37 = vector.broadcast %36 : f32 to vector<8x128xf32>
    %38 = arith.mulf %7, %37 : vector<8x128xf32>
    %c0_30 = arith.constant 0 : index
    %c1_31 = arith.constant 1 : index
    %39 = memref.load %arg4[%c0_30, %c1_31] : memref<16x4xf32, #tpu.memory_space<smem>>
    %40 = vector.broadcast %39 : f32 to vector<8x128xf32>
    %41 = arith.mulf %16, %40 : vector<8x128xf32>
    %42 = arith.addf %38, %41 : vector<8x128xf32>
    %c0_32 = arith.constant 0 : index
    %c2_33 = arith.constant 2 : index
    %43 = memref.load %arg4[%c0_32, %c2_33] : memref<16x4xf32, #tpu.memory_space<smem>>
    %44 = vector.broadcast %43 : f32 to vector<8x128xf32>
    %45 = arith.mulf %25, %44 : vector<8x128xf32>
    %46 = arith.addf %42, %45 : vector<8x128xf32>
    %c0_34 = arith.constant 0 : index
    %c3_35 = arith.constant 3 : index
    %47 = memref.load %arg4[%c0_34, %c3_35] : memref<16x4xf32, #tpu.memory_space<smem>>
    %48 = vector.broadcast %47 : f32 to vector<8x128xf32>
    %49 = arith.mulf %34, %48 : vector<8x128xf32>
    %50 = arith.addf %46, %49 : vector<8x128xf32>
    %c0_36 = arith.constant 0 : index
    %51 = memref.load %arg5[%c0_36] : memref<16xf32, #tpu.memory_space<smem>>
    %52 = vector.broadcast %51 : f32 to vector<8x128xf32>
    %53 = arith.addf %50, %52 : vector<8x128xf32>
    %c1_37 = arith.constant 1 : index
    %c0_38 = arith.constant 0 : index
    %54 = memref.load %arg4[%c1_37, %c0_38] : memref<16x4xf32, #tpu.memory_space<smem>>
    %55 = vector.broadcast %54 : f32 to vector<8x128xf32>
    %56 = arith.mulf %7, %55 : vector<8x128xf32>
    %c1_39 = arith.constant 1 : index
    %c1_40 = arith.constant 1 : index
    %57 = memref.load %arg4[%c1_39, %c1_40] : memref<16x4xf32, #tpu.memory_space<smem>>
    %58 = vector.broadcast %57 : f32 to vector<8x128xf32>
    %59 = arith.mulf %16, %58 : vector<8x128xf32>
    %60 = arith.addf %56, %59 : vector<8x128xf32>
    %c1_41 = arith.constant 1 : index
    %c2_42 = arith.constant 2 : index
    %61 = memref.load %arg4[%c1_41, %c2_42] : memref<16x4xf32, #tpu.memory_space<smem>>
    %62 = vector.broadcast %61 : f32 to vector<8x128xf32>
    %63 = arith.mulf %25, %62 : vector<8x128xf32>
    %64 = arith.addf %60, %63 : vector<8x128xf32>
    %c1_43 = arith.constant 1 : index
    %c3_44 = arith.constant 3 : index
    %65 = memref.load %arg4[%c1_43, %c3_44] : memref<16x4xf32, #tpu.memory_space<smem>>
    %66 = vector.broadcast %65 : f32 to vector<8x128xf32>
    %67 = arith.mulf %34, %66 : vector<8x128xf32>
    %68 = arith.addf %64, %67 : vector<8x128xf32>
    %c1_45 = arith.constant 1 : index
    %69 = memref.load %arg5[%c1_45] : memref<16xf32, #tpu.memory_space<smem>>
    %70 = vector.broadcast %69 : f32 to vector<8x128xf32>
    %71 = arith.addf %68, %70 : vector<8x128xf32>
    %c2_46 = arith.constant 2 : index
    %c0_47 = arith.constant 0 : index
    %72 = memref.load %arg4[%c2_46, %c0_47] : memref<16x4xf32, #tpu.memory_space<smem>>
    %73 = vector.broadcast %72 : f32 to vector<8x128xf32>
    %74 = arith.mulf %7, %73 : vector<8x128xf32>
    %c2_48 = arith.constant 2 : index
    %c1_49 = arith.constant 1 : index
    %75 = memref.load %arg4[%c2_48, %c1_49] : memref<16x4xf32, #tpu.memory_space<smem>>
    %76 = vector.broadcast %75 : f32 to vector<8x128xf32>
    %77 = arith.mulf %16, %76 : vector<8x128xf32>
    %78 = arith.addf %74, %77 : vector<8x128xf32>
    %c2_50 = arith.constant 2 : index
    %c2_51 = arith.constant 2 : index
    %79 = memref.load %arg4[%c2_50, %c2_51] : memref<16x4xf32, #tpu.memory_space<smem>>
    %80 = vector.broadcast %79 : f32 to vector<8x128xf32>
    %81 = arith.mulf %25, %80 : vector<8x128xf32>
    %82 = arith.addf %78, %81 : vector<8x128xf32>
    %c2_52 = arith.constant 2 : index
    %c3_53 = arith.constant 3 : index
    %83 = memref.load %arg4[%c2_52, %c3_53] : memref<16x4xf32, #tpu.memory_space<smem>>
    %84 = vector.broadcast %83 : f32 to vector<8x128xf32>
    %85 = arith.mulf %34, %84 : vector<8x128xf32>
    %86 = arith.addf %82, %85 : vector<8x128xf32>
    %c2_54 = arith.constant 2 : index
    %87 = memref.load %arg5[%c2_54] : memref<16xf32, #tpu.memory_space<smem>>
    %88 = vector.broadcast %87 : f32 to vector<8x128xf32>
    %89 = arith.addf %86, %88 : vector<8x128xf32>
    %c3_55 = arith.constant 3 : index
    %c0_56 = arith.constant 0 : index
    %90 = memref.load %arg4[%c3_55, %c0_56] : memref<16x4xf32, #tpu.memory_space<smem>>
    %91 = vector.broadcast %90 : f32 to vector<8x128xf32>
    %92 = arith.mulf %7, %91 : vector<8x128xf32>
    %c3_57 = arith.constant 3 : index
    %c1_58 = arith.constant 1 : index
    %93 = memref.load %arg4[%c3_57, %c1_58] : memref<16x4xf32, #tpu.memory_space<smem>>
    %94 = vector.broadcast %93 : f32 to vector<8x128xf32>
    %95 = arith.mulf %16, %94 : vector<8x128xf32>
    %96 = arith.addf %92, %95 : vector<8x128xf32>
    %c3_59 = arith.constant 3 : index
    %c2_60 = arith.constant 2 : index
    %97 = memref.load %arg4[%c3_59, %c2_60] : memref<16x4xf32, #tpu.memory_space<smem>>
    %98 = vector.broadcast %97 : f32 to vector<8x128xf32>
    %99 = arith.mulf %25, %98 : vector<8x128xf32>
    %100 = arith.addf %96, %99 : vector<8x128xf32>
    %c3_61 = arith.constant 3 : index
    %c3_62 = arith.constant 3 : index
    %101 = memref.load %arg4[%c3_61, %c3_62] : memref<16x4xf32, #tpu.memory_space<smem>>
    %102 = vector.broadcast %101 : f32 to vector<8x128xf32>
    %103 = arith.mulf %34, %102 : vector<8x128xf32>
    %104 = arith.addf %100, %103 : vector<8x128xf32>
    %c3_63 = arith.constant 3 : index
    %105 = memref.load %arg5[%c3_63] : memref<16xf32, #tpu.memory_space<smem>>
    %106 = vector.broadcast %105 : f32 to vector<8x128xf32>
    %107 = arith.addf %104, %106 : vector<8x128xf32>
    %cst = arith.constant 0.000000e+00 : f32
    %108 = vector.broadcast %cst : f32 to vector<8x128xf32>
    %109 = arith.cmpf oge, %53, %108 : vector<8x128xf32>
    %cst_64 = arith.constant 1.000000e-01 : f32
    %110 = vector.broadcast %cst_64 : f32 to vector<8x128xf32>
    %111 = arith.mulf %110, %53 : vector<8x128xf32>
    %112 = arith.select %109, %53, %111 : vector<8x128xi1>, vector<8x128xf32>
    %cst_65 = arith.constant 0.000000e+00 : f32
    %113 = vector.broadcast %cst_65 : f32 to vector<8x128xf32>
    %114 = arith.cmpf oge, %71, %113 : vector<8x128xf32>
    %cst_66 = arith.constant 1.000000e-01 : f32
    %115 = vector.broadcast %cst_66 : f32 to vector<8x128xf32>
    %116 = arith.mulf %115, %71 : vector<8x128xf32>
    %117 = arith.select %114, %71, %116 : vector<8x128xi1>, vector<8x128xf32>
    %cst_67 = arith.constant 0.000000e+00 : f32
    %118 = vector.broadcast %cst_67 : f32 to vector<8x128xf32>
    %119 = arith.cmpf oge, %89, %118 : vector<8x128xf32>
    %cst_68 = arith.constant 1.000000e-01 : f32
    %120 = vector.broadcast %cst_68 : f32 to vector<8x128xf32>
    %121 = arith.mulf %120, %89 : vector<8x128xf32>
    %122 = arith.select %119, %89, %121 : vector<8x128xi1>, vector<8x128xf32>
    %cst_69 = arith.constant 0.000000e+00 : f32
    %123 = vector.broadcast %cst_69 : f32 to vector<8x128xf32>
    %124 = arith.cmpf oge, %107, %123 : vector<8x128xf32>
    %cst_70 = arith.constant 1.000000e-01 : f32
    %125 = vector.broadcast %cst_70 : f32 to vector<8x128xf32>
    %126 = arith.mulf %125, %107 : vector<8x128xf32>
    %127 = arith.select %124, %107, %126 : vector<8x128xi1>, vector<8x128xf32>
    %c4 = arith.constant 4 : index
    %c0_71 = arith.constant 0 : index
    %128 = memref.load %arg4[%c4, %c0_71] : memref<16x4xf32, #tpu.memory_space<smem>>
    %129 = vector.broadcast %128 : f32 to vector<8x128xf32>
    %130 = arith.mulf %112, %129 : vector<8x128xf32>
    %c4_72 = arith.constant 4 : index
    %c1_73 = arith.constant 1 : index
    %131 = memref.load %arg4[%c4_72, %c1_73] : memref<16x4xf32, #tpu.memory_space<smem>>
    %132 = vector.broadcast %131 : f32 to vector<8x128xf32>
    %133 = arith.mulf %117, %132 : vector<8x128xf32>
    %134 = arith.addf %130, %133 : vector<8x128xf32>
    %c4_74 = arith.constant 4 : index
    %c2_75 = arith.constant 2 : index
    %135 = memref.load %arg4[%c4_74, %c2_75] : memref<16x4xf32, #tpu.memory_space<smem>>
    %136 = vector.broadcast %135 : f32 to vector<8x128xf32>
    %137 = arith.mulf %122, %136 : vector<8x128xf32>
    %138 = arith.addf %134, %137 : vector<8x128xf32>
    %c4_76 = arith.constant 4 : index
    %c3_77 = arith.constant 3 : index
    %139 = memref.load %arg4[%c4_76, %c3_77] : memref<16x4xf32, #tpu.memory_space<smem>>
    %140 = vector.broadcast %139 : f32 to vector<8x128xf32>
    %141 = arith.mulf %127, %140 : vector<8x128xf32>
    %142 = arith.addf %138, %141 : vector<8x128xf32>
    %c4_78 = arith.constant 4 : index
    %143 = memref.load %arg5[%c4_78] : memref<16xf32, #tpu.memory_space<smem>>
    %144 = vector.broadcast %143 : f32 to vector<8x128xf32>
    %145 = arith.addf %142, %144 : vector<8x128xf32>
    %c5 = arith.constant 5 : index
    %c0_79 = arith.constant 0 : index
    %146 = memref.load %arg4[%c5, %c0_79] : memref<16x4xf32, #tpu.memory_space<smem>>
    %147 = vector.broadcast %146 : f32 to vector<8x128xf32>
    %148 = arith.mulf %112, %147 : vector<8x128xf32>
    %c5_80 = arith.constant 5 : index
    %c1_81 = arith.constant 1 : index
    %149 = memref.load %arg4[%c5_80, %c1_81] : memref<16x4xf32, #tpu.memory_space<smem>>
    %150 = vector.broadcast %149 : f32 to vector<8x128xf32>
    %151 = arith.mulf %117, %150 : vector<8x128xf32>
    %152 = arith.addf %148, %151 : vector<8x128xf32>
    %c5_82 = arith.constant 5 : index
    %c2_83 = arith.constant 2 : index
    %153 = memref.load %arg4[%c5_82, %c2_83] : memref<16x4xf32, #tpu.memory_space<smem>>
    %154 = vector.broadcast %153 : f32 to vector<8x128xf32>
    %155 = arith.mulf %122, %154 : vector<8x128xf32>
    %156 = arith.addf %152, %155 : vector<8x128xf32>
    %c5_84 = arith.constant 5 : index
    %c3_85 = arith.constant 3 : index
    %157 = memref.load %arg4[%c5_84, %c3_85] : memref<16x4xf32, #tpu.memory_space<smem>>
    %158 = vector.broadcast %157 : f32 to vector<8x128xf32>
    %159 = arith.mulf %127, %158 : vector<8x128xf32>
    %160 = arith.addf %156, %159 : vector<8x128xf32>
    %c5_86 = arith.constant 5 : index
    %161 = memref.load %arg5[%c5_86] : memref<16xf32, #tpu.memory_space<smem>>
    %162 = vector.broadcast %161 : f32 to vector<8x128xf32>
    %163 = arith.addf %160, %162 : vector<8x128xf32>
    %c6 = arith.constant 6 : index
    %c0_87 = arith.constant 0 : index
    %164 = memref.load %arg4[%c6, %c0_87] : memref<16x4xf32, #tpu.memory_space<smem>>
    %165 = vector.broadcast %164 : f32 to vector<8x128xf32>
    %166 = arith.mulf %112, %165 : vector<8x128xf32>
    %c6_88 = arith.constant 6 : index
    %c1_89 = arith.constant 1 : index
    %167 = memref.load %arg4[%c6_88, %c1_89] : memref<16x4xf32, #tpu.memory_space<smem>>
    %168 = vector.broadcast %167 : f32 to vector<8x128xf32>
    %169 = arith.mulf %117, %168 : vector<8x128xf32>
    %170 = arith.addf %166, %169 : vector<8x128xf32>
    %c6_90 = arith.constant 6 : index
    %c2_91 = arith.constant 2 : index
    %171 = memref.load %arg4[%c6_90, %c2_91] : memref<16x4xf32, #tpu.memory_space<smem>>
    %172 = vector.broadcast %171 : f32 to vector<8x128xf32>
    %173 = arith.mulf %122, %172 : vector<8x128xf32>
    %174 = arith.addf %170, %173 : vector<8x128xf32>
    %c6_92 = arith.constant 6 : index
    %c3_93 = arith.constant 3 : index
    %175 = memref.load %arg4[%c6_92, %c3_93] : memref<16x4xf32, #tpu.memory_space<smem>>
    %176 = vector.broadcast %175 : f32 to vector<8x128xf32>
    %177 = arith.mulf %127, %176 : vector<8x128xf32>
    %178 = arith.addf %174, %177 : vector<8x128xf32>
    %c6_94 = arith.constant 6 : index
    %179 = memref.load %arg5[%c6_94] : memref<16xf32, #tpu.memory_space<smem>>
    %180 = vector.broadcast %179 : f32 to vector<8x128xf32>
    %181 = arith.addf %178, %180 : vector<8x128xf32>
    %c7 = arith.constant 7 : index
    %c0_95 = arith.constant 0 : index
    %182 = memref.load %arg4[%c7, %c0_95] : memref<16x4xf32, #tpu.memory_space<smem>>
    %183 = vector.broadcast %182 : f32 to vector<8x128xf32>
    %184 = arith.mulf %112, %183 : vector<8x128xf32>
    %c7_96 = arith.constant 7 : index
    %c1_97 = arith.constant 1 : index
    %185 = memref.load %arg4[%c7_96, %c1_97] : memref<16x4xf32, #tpu.memory_space<smem>>
    %186 = vector.broadcast %185 : f32 to vector<8x128xf32>
    %187 = arith.mulf %117, %186 : vector<8x128xf32>
    %188 = arith.addf %184, %187 : vector<8x128xf32>
    %c7_98 = arith.constant 7 : index
    %c2_99 = arith.constant 2 : index
    %189 = memref.load %arg4[%c7_98, %c2_99] : memref<16x4xf32, #tpu.memory_space<smem>>
    %190 = vector.broadcast %189 : f32 to vector<8x128xf32>
    %191 = arith.mulf %122, %190 : vector<8x128xf32>
    %192 = arith.addf %188, %191 : vector<8x128xf32>
    %c7_100 = arith.constant 7 : index
    %c3_101 = arith.constant 3 : index
    %193 = memref.load %arg4[%c7_100, %c3_101] : memref<16x4xf32, #tpu.memory_space<smem>>
    %194 = vector.broadcast %193 : f32 to vector<8x128xf32>
    %195 = arith.mulf %127, %194 : vector<8x128xf32>
    %196 = arith.addf %192, %195 : vector<8x128xf32>
    %c7_102 = arith.constant 7 : index
    %197 = memref.load %arg5[%c7_102] : memref<16xf32, #tpu.memory_space<smem>>
    %198 = vector.broadcast %197 : f32 to vector<8x128xf32>
    %199 = arith.addf %196, %198 : vector<8x128xf32>
    %c8 = arith.constant 8 : index
    %c0_103 = arith.constant 0 : index
    %200 = memref.load %arg4[%c8, %c0_103] : memref<16x4xf32, #tpu.memory_space<smem>>
    %201 = vector.broadcast %200 : f32 to vector<8x128xf32>
    %202 = arith.mulf %8, %201 : vector<8x128xf32>
    %c8_104 = arith.constant 8 : index
    %c1_105 = arith.constant 1 : index
    %203 = memref.load %arg4[%c8_104, %c1_105] : memref<16x4xf32, #tpu.memory_space<smem>>
    %204 = vector.broadcast %203 : f32 to vector<8x128xf32>
    %205 = arith.mulf %17, %204 : vector<8x128xf32>
    %206 = arith.addf %202, %205 : vector<8x128xf32>
    %c8_106 = arith.constant 8 : index
    %c2_107 = arith.constant 2 : index
    %207 = memref.load %arg4[%c8_106, %c2_107] : memref<16x4xf32, #tpu.memory_space<smem>>
    %208 = vector.broadcast %207 : f32 to vector<8x128xf32>
    %209 = arith.mulf %26, %208 : vector<8x128xf32>
    %210 = arith.addf %206, %209 : vector<8x128xf32>
    %c8_108 = arith.constant 8 : index
    %c3_109 = arith.constant 3 : index
    %211 = memref.load %arg4[%c8_108, %c3_109] : memref<16x4xf32, #tpu.memory_space<smem>>
    %212 = vector.broadcast %211 : f32 to vector<8x128xf32>
    %213 = arith.mulf %35, %212 : vector<8x128xf32>
    %214 = arith.addf %210, %213 : vector<8x128xf32>
    %c8_110 = arith.constant 8 : index
    %215 = memref.load %arg5[%c8_110] : memref<16xf32, #tpu.memory_space<smem>>
    %216 = vector.broadcast %215 : f32 to vector<8x128xf32>
    %217 = arith.addf %214, %216 : vector<8x128xf32>
    %c9 = arith.constant 9 : index
    %c0_111 = arith.constant 0 : index
    %218 = memref.load %arg4[%c9, %c0_111] : memref<16x4xf32, #tpu.memory_space<smem>>
    %219 = vector.broadcast %218 : f32 to vector<8x128xf32>
    %220 = arith.mulf %8, %219 : vector<8x128xf32>
    %c9_112 = arith.constant 9 : index
    %c1_113 = arith.constant 1 : index
    %221 = memref.load %arg4[%c9_112, %c1_113] : memref<16x4xf32, #tpu.memory_space<smem>>
    %222 = vector.broadcast %221 : f32 to vector<8x128xf32>
    %223 = arith.mulf %17, %222 : vector<8x128xf32>
    %224 = arith.addf %220, %223 : vector<8x128xf32>
    %c9_114 = arith.constant 9 : index
    %c2_115 = arith.constant 2 : index
    %225 = memref.load %arg4[%c9_114, %c2_115] : memref<16x4xf32, #tpu.memory_space<smem>>
    %226 = vector.broadcast %225 : f32 to vector<8x128xf32>
    %227 = arith.mulf %26, %226 : vector<8x128xf32>
    %228 = arith.addf %224, %227 : vector<8x128xf32>
    %c9_116 = arith.constant 9 : index
    %c3_117 = arith.constant 3 : index
    %229 = memref.load %arg4[%c9_116, %c3_117] : memref<16x4xf32, #tpu.memory_space<smem>>
    %230 = vector.broadcast %229 : f32 to vector<8x128xf32>
    %231 = arith.mulf %35, %230 : vector<8x128xf32>
    %232 = arith.addf %228, %231 : vector<8x128xf32>
    %c9_118 = arith.constant 9 : index
    %233 = memref.load %arg5[%c9_118] : memref<16xf32, #tpu.memory_space<smem>>
    %234 = vector.broadcast %233 : f32 to vector<8x128xf32>
    %235 = arith.addf %232, %234 : vector<8x128xf32>
    %c10 = arith.constant 10 : index
    %c0_119 = arith.constant 0 : index
    %236 = memref.load %arg4[%c10, %c0_119] : memref<16x4xf32, #tpu.memory_space<smem>>
    %237 = vector.broadcast %236 : f32 to vector<8x128xf32>
    %238 = arith.mulf %8, %237 : vector<8x128xf32>
    %c10_120 = arith.constant 10 : index
    %c1_121 = arith.constant 1 : index
    %239 = memref.load %arg4[%c10_120, %c1_121] : memref<16x4xf32, #tpu.memory_space<smem>>
    %240 = vector.broadcast %239 : f32 to vector<8x128xf32>
    %241 = arith.mulf %17, %240 : vector<8x128xf32>
    %242 = arith.addf %238, %241 : vector<8x128xf32>
    %c10_122 = arith.constant 10 : index
    %c2_123 = arith.constant 2 : index
    %243 = memref.load %arg4[%c10_122, %c2_123] : memref<16x4xf32, #tpu.memory_space<smem>>
    %244 = vector.broadcast %243 : f32 to vector<8x128xf32>
    %245 = arith.mulf %26, %244 : vector<8x128xf32>
    %246 = arith.addf %242, %245 : vector<8x128xf32>
    %c10_124 = arith.constant 10 : index
    %c3_125 = arith.constant 3 : index
    %247 = memref.load %arg4[%c10_124, %c3_125] : memref<16x4xf32, #tpu.memory_space<smem>>
    %248 = vector.broadcast %247 : f32 to vector<8x128xf32>
    %249 = arith.mulf %35, %248 : vector<8x128xf32>
    %250 = arith.addf %246, %249 : vector<8x128xf32>
    %c10_126 = arith.constant 10 : index
    %251 = memref.load %arg5[%c10_126] : memref<16xf32, #tpu.memory_space<smem>>
    %252 = vector.broadcast %251 : f32 to vector<8x128xf32>
    %253 = arith.addf %250, %252 : vector<8x128xf32>
    %c11 = arith.constant 11 : index
    %c0_127 = arith.constant 0 : index
    %254 = memref.load %arg4[%c11, %c0_127] : memref<16x4xf32, #tpu.memory_space<smem>>
    %255 = vector.broadcast %254 : f32 to vector<8x128xf32>
    %256 = arith.mulf %8, %255 : vector<8x128xf32>
    %c11_128 = arith.constant 11 : index
    %c1_129 = arith.constant 1 : index
    %257 = memref.load %arg4[%c11_128, %c1_129] : memref<16x4xf32, #tpu.memory_space<smem>>
    %258 = vector.broadcast %257 : f32 to vector<8x128xf32>
    %259 = arith.mulf %17, %258 : vector<8x128xf32>
    %260 = arith.addf %256, %259 : vector<8x128xf32>
    %c11_130 = arith.constant 11 : index
    %c2_131 = arith.constant 2 : index
    %261 = memref.load %arg4[%c11_130, %c2_131] : memref<16x4xf32, #tpu.memory_space<smem>>
    %262 = vector.broadcast %261 : f32 to vector<8x128xf32>
    %263 = arith.mulf %26, %262 : vector<8x128xf32>
    %264 = arith.addf %260, %263 : vector<8x128xf32>
    %c11_132 = arith.constant 11 : index
    %c3_133 = arith.constant 3 : index
    %265 = memref.load %arg4[%c11_132, %c3_133] : memref<16x4xf32, #tpu.memory_space<smem>>
    %266 = vector.broadcast %265 : f32 to vector<8x128xf32>
    %267 = arith.mulf %35, %266 : vector<8x128xf32>
    %268 = arith.addf %264, %267 : vector<8x128xf32>
    %c11_134 = arith.constant 11 : index
    %269 = memref.load %arg5[%c11_134] : memref<16xf32, #tpu.memory_space<smem>>
    %270 = vector.broadcast %269 : f32 to vector<8x128xf32>
    %271 = arith.addf %268, %270 : vector<8x128xf32>
    %cst_135 = arith.constant 0.000000e+00 : f32
    %272 = vector.broadcast %cst_135 : f32 to vector<8x128xf32>
    %273 = arith.cmpf oge, %217, %272 : vector<8x128xf32>
    %cst_136 = arith.constant 1.000000e-01 : f32
    %274 = vector.broadcast %cst_136 : f32 to vector<8x128xf32>
    %275 = arith.mulf %274, %217 : vector<8x128xf32>
    %276 = arith.select %273, %217, %275 : vector<8x128xi1>, vector<8x128xf32>
    %cst_137 = arith.constant 0.000000e+00 : f32
    %277 = vector.broadcast %cst_137 : f32 to vector<8x128xf32>
    %278 = arith.cmpf oge, %235, %277 : vector<8x128xf32>
    %cst_138 = arith.constant 1.000000e-01 : f32
    %279 = vector.broadcast %cst_138 : f32 to vector<8x128xf32>
    %280 = arith.mulf %279, %235 : vector<8x128xf32>
    %281 = arith.select %278, %235, %280 : vector<8x128xi1>, vector<8x128xf32>
    %cst_139 = arith.constant 0.000000e+00 : f32
    %282 = vector.broadcast %cst_139 : f32 to vector<8x128xf32>
    %283 = arith.cmpf oge, %253, %282 : vector<8x128xf32>
    %cst_140 = arith.constant 1.000000e-01 : f32
    %284 = vector.broadcast %cst_140 : f32 to vector<8x128xf32>
    %285 = arith.mulf %284, %253 : vector<8x128xf32>
    %286 = arith.select %283, %253, %285 : vector<8x128xi1>, vector<8x128xf32>
    %cst_141 = arith.constant 0.000000e+00 : f32
    %287 = vector.broadcast %cst_141 : f32 to vector<8x128xf32>
    %288 = arith.cmpf oge, %271, %287 : vector<8x128xf32>
    %cst_142 = arith.constant 1.000000e-01 : f32
    %289 = vector.broadcast %cst_142 : f32 to vector<8x128xf32>
    %290 = arith.mulf %289, %271 : vector<8x128xf32>
    %291 = arith.select %288, %271, %290 : vector<8x128xi1>, vector<8x128xf32>
    %c12 = arith.constant 12 : index
    %c0_143 = arith.constant 0 : index
    %292 = memref.load %arg4[%c12, %c0_143] : memref<16x4xf32, #tpu.memory_space<smem>>
    %293 = vector.broadcast %292 : f32 to vector<8x128xf32>
    %294 = arith.mulf %276, %293 : vector<8x128xf32>
    %c12_144 = arith.constant 12 : index
    %c1_145 = arith.constant 1 : index
    %295 = memref.load %arg4[%c12_144, %c1_145] : memref<16x4xf32, #tpu.memory_space<smem>>
    %296 = vector.broadcast %295 : f32 to vector<8x128xf32>
    %297 = arith.mulf %281, %296 : vector<8x128xf32>
    %298 = arith.addf %294, %297 : vector<8x128xf32>
    %c12_146 = arith.constant 12 : index
    %c2_147 = arith.constant 2 : index
    %299 = memref.load %arg4[%c12_146, %c2_147] : memref<16x4xf32, #tpu.memory_space<smem>>
    %300 = vector.broadcast %299 : f32 to vector<8x128xf32>
    %301 = arith.mulf %286, %300 : vector<8x128xf32>
    %302 = arith.addf %298, %301 : vector<8x128xf32>
    %c12_148 = arith.constant 12 : index
    %c3_149 = arith.constant 3 : index
    %303 = memref.load %arg4[%c12_148, %c3_149] : memref<16x4xf32, #tpu.memory_space<smem>>
    %304 = vector.broadcast %303 : f32 to vector<8x128xf32>
    %305 = arith.mulf %291, %304 : vector<8x128xf32>
    %306 = arith.addf %302, %305 : vector<8x128xf32>
    %c12_150 = arith.constant 12 : index
    %307 = memref.load %arg5[%c12_150] : memref<16xf32, #tpu.memory_space<smem>>
    %308 = vector.broadcast %307 : f32 to vector<8x128xf32>
    %309 = arith.addf %306, %308 : vector<8x128xf32>
    %c13 = arith.constant 13 : index
    %c0_151 = arith.constant 0 : index
    %310 = memref.load %arg4[%c13, %c0_151] : memref<16x4xf32, #tpu.memory_space<smem>>
    %311 = vector.broadcast %310 : f32 to vector<8x128xf32>
    %312 = arith.mulf %276, %311 : vector<8x128xf32>
    %c13_152 = arith.constant 13 : index
    %c1_153 = arith.constant 1 : index
    %313 = memref.load %arg4[%c13_152, %c1_153] : memref<16x4xf32, #tpu.memory_space<smem>>
    %314 = vector.broadcast %313 : f32 to vector<8x128xf32>
    %315 = arith.mulf %281, %314 : vector<8x128xf32>
    %316 = arith.addf %312, %315 : vector<8x128xf32>
    %c13_154 = arith.constant 13 : index
    %c2_155 = arith.constant 2 : index
    %317 = memref.load %arg4[%c13_154, %c2_155] : memref<16x4xf32, #tpu.memory_space<smem>>
    %318 = vector.broadcast %317 : f32 to vector<8x128xf32>
    %319 = arith.mulf %286, %318 : vector<8x128xf32>
    %320 = arith.addf %316, %319 : vector<8x128xf32>
    %c13_156 = arith.constant 13 : index
    %c3_157 = arith.constant 3 : index
    %321 = memref.load %arg4[%c13_156, %c3_157] : memref<16x4xf32, #tpu.memory_space<smem>>
    %322 = vector.broadcast %321 : f32 to vector<8x128xf32>
    %323 = arith.mulf %291, %322 : vector<8x128xf32>
    %324 = arith.addf %320, %323 : vector<8x128xf32>
    %c13_158 = arith.constant 13 : index
    %325 = memref.load %arg5[%c13_158] : memref<16xf32, #tpu.memory_space<smem>>
    %326 = vector.broadcast %325 : f32 to vector<8x128xf32>
    %327 = arith.addf %324, %326 : vector<8x128xf32>
    %c14 = arith.constant 14 : index
    %c0_159 = arith.constant 0 : index
    %328 = memref.load %arg4[%c14, %c0_159] : memref<16x4xf32, #tpu.memory_space<smem>>
    %329 = vector.broadcast %328 : f32 to vector<8x128xf32>
    %330 = arith.mulf %276, %329 : vector<8x128xf32>
    %c14_160 = arith.constant 14 : index
    %c1_161 = arith.constant 1 : index
    %331 = memref.load %arg4[%c14_160, %c1_161] : memref<16x4xf32, #tpu.memory_space<smem>>
    %332 = vector.broadcast %331 : f32 to vector<8x128xf32>
    %333 = arith.mulf %281, %332 : vector<8x128xf32>
    %334 = arith.addf %330, %333 : vector<8x128xf32>
    %c14_162 = arith.constant 14 : index
    %c2_163 = arith.constant 2 : index
    %335 = memref.load %arg4[%c14_162, %c2_163] : memref<16x4xf32, #tpu.memory_space<smem>>
    %336 = vector.broadcast %335 : f32 to vector<8x128xf32>
    %337 = arith.mulf %286, %336 : vector<8x128xf32>
    %338 = arith.addf %334, %337 : vector<8x128xf32>
    %c14_164 = arith.constant 14 : index
    %c3_165 = arith.constant 3 : index
    %339 = memref.load %arg4[%c14_164, %c3_165] : memref<16x4xf32, #tpu.memory_space<smem>>
    %340 = vector.broadcast %339 : f32 to vector<8x128xf32>
    %341 = arith.mulf %291, %340 : vector<8x128xf32>
    %342 = arith.addf %338, %341 : vector<8x128xf32>
    %c14_166 = arith.constant 14 : index
    %343 = memref.load %arg5[%c14_166] : memref<16xf32, #tpu.memory_space<smem>>
    %344 = vector.broadcast %343 : f32 to vector<8x128xf32>
    %345 = arith.addf %342, %344 : vector<8x128xf32>
    %c15 = arith.constant 15 : index
    %c0_167 = arith.constant 0 : index
    %346 = memref.load %arg4[%c15, %c0_167] : memref<16x4xf32, #tpu.memory_space<smem>>
    %347 = vector.broadcast %346 : f32 to vector<8x128xf32>
    %348 = arith.mulf %276, %347 : vector<8x128xf32>
    %c15_168 = arith.constant 15 : index
    %c1_169 = arith.constant 1 : index
    %349 = memref.load %arg4[%c15_168, %c1_169] : memref<16x4xf32, #tpu.memory_space<smem>>
    %350 = vector.broadcast %349 : f32 to vector<8x128xf32>
    %351 = arith.mulf %281, %350 : vector<8x128xf32>
    %352 = arith.addf %348, %351 : vector<8x128xf32>
    %c15_170 = arith.constant 15 : index
    %c2_171 = arith.constant 2 : index
    %353 = memref.load %arg4[%c15_170, %c2_171] : memref<16x4xf32, #tpu.memory_space<smem>>
    %354 = vector.broadcast %353 : f32 to vector<8x128xf32>
    %355 = arith.mulf %286, %354 : vector<8x128xf32>
    %356 = arith.addf %352, %355 : vector<8x128xf32>
    %c15_172 = arith.constant 15 : index
    %c3_173 = arith.constant 3 : index
    %357 = memref.load %arg4[%c15_172, %c3_173] : memref<16x4xf32, #tpu.memory_space<smem>>
    %358 = vector.broadcast %357 : f32 to vector<8x128xf32>
    %359 = arith.mulf %291, %358 : vector<8x128xf32>
    %360 = arith.addf %356, %359 : vector<8x128xf32>
    %c15_174 = arith.constant 15 : index
    %361 = memref.load %arg5[%c15_174] : memref<16xf32, #tpu.memory_space<smem>>
    %362 = vector.broadcast %361 : f32 to vector<8x128xf32>
    %363 = arith.addf %360, %362 : vector<8x128xf32>
    %364 = math.cos %309 : vector<8x128xf32>
    %365 = arith.mulf %145, %364 : vector<8x128xf32>
    %c0_175 = arith.constant 0 : index
    %c0_176 = arith.constant 0 : index
    %c0_177 = arith.constant 0 : index
    %c0_178 = arith.constant 0 : index
    %366 = vector.load %arg6[%c0_175, %c0_176, %c0_177, %c0_178] : memref<1x4x8x128xf32, #tpu.memory_space<vmem>>, vector<1x1x8x128xf32>
    %367 = vector.shape_cast %366 : vector<1x1x8x128xf32> to vector<8x128xf32>
    %368 = vector.shape_cast %365 : vector<8x128xf32> to vector<1x1x8x128xf32>
    tpu.vector_store %arg6[%c0_175, %c0_176, %c0_177, %c0_178], %368 {strides = array<i32>} : memref<1x4x8x128xf32, #tpu.memory_space<vmem>>, vector<1x1x8x128xf32>,
    %369 = math.sin %309 : vector<8x128xf32>
    %370 = arith.mulf %145, %369 : vector<8x128xf32>
    %c0_179 = arith.constant 0 : index
    %c0_180 = arith.constant 0 : index
    %c0_181 = arith.constant 0 : index
    %c0_182 = arith.constant 0 : index
    %371 = vector.load %arg7[%c0_179, %c0_180, %c0_181, %c0_182] : memref<1x4x8x128xf32, #tpu.memory_space<vmem>>, vector<1x1x8x128xf32>
    %372 = vector.shape_cast %371 : vector<1x1x8x128xf32> to vector<8x128xf32>
    %373 = vector.shape_cast %370 : vector<8x128xf32> to vector<1x1x8x128xf32>
    tpu.vector_store %arg7[%c0_179, %c0_180, %c0_181, %c0_182], %373 {strides = array<i32>} : memref<1x4x8x128xf32, #tpu.memory_space<vmem>>, vector<1x1x8x128xf32>,
    %374 = math.cos %327 : vector<8x128xf32>
    %375 = arith.mulf %163, %374 : vector<8x128xf32>
    %c0_183 = arith.constant 0 : index
    %c1_184 = arith.constant 1 : index
    %c0_185 = arith.constant 0 : index
    %c0_186 = arith.constant 0 : index
    %376 = vector.load %arg6[%c0_183, %c1_184, %c0_185, %c0_186] : memref<1x4x8x128xf32, #tpu.memory_space<vmem>>, vector<1x1x8x128xf32>
    %377 = vector.shape_cast %376 : vector<1x1x8x128xf32> to vector<8x128xf32>
    %378 = vector.shape_cast %375 : vector<8x128xf32> to vector<1x1x8x128xf32>
    tpu.vector_store %arg6[%c0_183, %c1_184, %c0_185, %c0_186], %378 {strides = array<i32>} : memref<1x4x8x128xf32, #tpu.memory_space<vmem>>, vector<1x1x8x128xf32>,
    %379 = math.sin %327 : vector<8x128xf32>
    %380 = arith.mulf %163, %379 : vector<8x128xf32>
    %c0_187 = arith.constant 0 : index
    %c1_188 = arith.constant 1 : index
    %c0_189 = arith.constant 0 : index
    %c0_190 = arith.constant 0 : index
    %381 = vector.load %arg7[%c0_187, %c1_188, %c0_189, %c0_190] : memref<1x4x8x128xf32, #tpu.memory_space<vmem>>, vector<1x1x8x128xf32>
    %382 = vector.shape_cast %381 : vector<1x1x8x128xf32> to vector<8x128xf32>
    %383 = vector.shape_cast %380 : vector<8x128xf32> to vector<1x1x8x128xf32>
    tpu.vector_store %arg7[%c0_187, %c1_188, %c0_189, %c0_190], %383 {strides = array<i32>} : memref<1x4x8x128xf32, #tpu.memory_space<vmem>>, vector<1x1x8x128xf32>,
    %384 = math.cos %345 : vector<8x128xf32>
    %385 = arith.mulf %181, %384 : vector<8x128xf32>
    %c0_191 = arith.constant 0 : index
    %c2_192 = arith.constant 2 : index
    %c0_193 = arith.constant 0 : index
    %c0_194 = arith.constant 0 : index
    %386 = vector.load %arg6[%c0_191, %c2_192, %c0_193, %c0_194] : memref<1x4x8x128xf32, #tpu.memory_space<vmem>>, vector<1x1x8x128xf32>
    %387 = vector.shape_cast %386 : vector<1x1x8x128xf32> to vector<8x128xf32>
    %388 = vector.shape_cast %385 : vector<8x128xf32> to vector<1x1x8x128xf32>
    tpu.vector_store %arg6[%c0_191, %c2_192, %c0_193, %c0_194], %388 {strides = array<i32>} : memref<1x4x8x128xf32, #tpu.memory_space<vmem>>, vector<1x1x8x128xf32>,
    %389 = math.sin %345 : vector<8x128xf32>
    %390 = arith.mulf %181, %389 : vector<8x128xf32>
    %c0_195 = arith.constant 0 : index
    %c2_196 = arith.constant 2 : index
    %c0_197 = arith.constant 0 : index
    %c0_198 = arith.constant 0 : index
    %391 = vector.load %arg7[%c0_195, %c2_196, %c0_197, %c0_198] : memref<1x4x8x128xf32, #tpu.memory_space<vmem>>, vector<1x1x8x128xf32>
    %392 = vector.shape_cast %391 : vector<1x1x8x128xf32> to vector<8x128xf32>
    %393 = vector.shape_cast %390 : vector<8x128xf32> to vector<1x1x8x128xf32>
    tpu.vector_store %arg7[%c0_195, %c2_196, %c0_197, %c0_198], %393 {strides = array<i32>} : memref<1x4x8x128xf32, #tpu.memory_space<vmem>>, vector<1x1x8x128xf32>,
    %394 = math.cos %363 : vector<8x128xf32>
    %395 = arith.mulf %199, %394 : vector<8x128xf32>
    %c0_199 = arith.constant 0 : index
    %c3_200 = arith.constant 3 : index
    %c0_201 = arith.constant 0 : index
    %c0_202 = arith.constant 0 : index
    %396 = vector.load %arg6[%c0_199, %c3_200, %c0_201, %c0_202] : memref<1x4x8x128xf32, #tpu.memory_space<vmem>>, vector<1x1x8x128xf32>
    %397 = vector.shape_cast %396 : vector<1x1x8x128xf32> to vector<8x128xf32>
    %398 = vector.shape_cast %395 : vector<8x128xf32> to vector<1x1x8x128xf32>
    tpu.vector_store %arg6[%c0_199, %c3_200, %c0_201, %c0_202], %398 {strides = array<i32>} : memref<1x4x8x128xf32, #tpu.memory_space<vmem>>, vector<1x1x8x128xf32>,
    %399 = math.sin %363 : vector<8x128xf32>
    %400 = arith.mulf %199, %399 : vector<8x128xf32>
    %c0_203 = arith.constant 0 : index
    %c3_204 = arith.constant 3 : index
    %c0_205 = arith.constant 0 : index
    %c0_206 = arith.constant 0 : index
    %401 = vector.load %arg7[%c0_203, %c3_204, %c0_205, %c0_206] : memref<1x4x8x128xf32, #tpu.memory_space<vmem>>, vector<1x1x8x128xf32>
    %402 = vector.shape_cast %401 : vector<1x1x8x128xf32> to vector<8x128xf32>
    %403 = vector.shape_cast %400 : vector<8x128xf32> to vector<1x1x8x128xf32>
    tpu.vector_store %arg7[%c0_203, %c3_204, %c0_205, %c0_206], %403 {strides = array<i32>} : memref<1x4x8x128xf32, #tpu.memory_space<vmem>>, vector<1x1x8x128xf32>,
    return
  }
  func.func @transform_0(%arg0: i32, %arg1: i32) -> (i32, i32, i32, i32) {
    %c0_i32 = arith.constant 0 : i32
    %c0_i32_0 = arith.constant 0 : i32
    %c0_i32_1 = arith.constant 0 : i32
    return %arg0, %c0_i32, %arg1, %c0_i32_0 : i32, i32, i32, i32
  }
  func.func @transform_1(%arg0: i32, %arg1: i32) -> (i32, i32, i32, i32) {
    %c0_i32 = arith.constant 0 : i32
    %c0_i32_0 = arith.constant 0 : i32
    %c0_i32_1 = arith.constant 0 : i32
    return %arg0, %c0_i32, %arg1, %c0_i32_0 : i32, i32, i32, i32
  }
  func.func @transform_2(%arg0: i32, %arg1: i32) -> (i32, i32) {
    %c0_i32 = arith.constant 0 : i32
    %c0_i32_0 = arith.constant 0 : i32
    %c0_i32_1 = arith.constant 0 : i32
    return %c0_i32, %c0_i32_0 : i32, i32
  }
  func.func @transform_3(%arg0: i32, %arg1: i32) -> i32 {
    %c0_i32 = arith.constant 0 : i32
    %c0_i32_0 = arith.constant 0 : i32
    return %c0_i32 : i32
  }
  func.func @transform_4(%arg0: i32, %arg1: i32) -> (i32, i32, i32, i32) {
    %c0_i32 = arith.constant 0 : i32
    %c0_i32_0 = arith.constant 0 : i32
    %c0_i32_1 = arith.constant 0 : i32
    return %arg0, %c0_i32, %arg1, %c0_i32_0 : i32, i32, i32, i32
  }
  func.func @transform_5(%arg0: i32, %arg1: i32) -> (i32, i32, i32, i32) {
    %c0_i32 = arith.constant 0 : i32
    %c0_i32_0 = arith.constant 0 : i32
    %c0_i32_1 = arith.constant 0 : i32
    return %arg0, %c0_i32, %arg1, %c0_i32_0 : i32, i32, i32, i32
  }
}

</mosaic_0001>

<bundles_post_ra>
// kernel: fre_block_forward.2
= control target key start
LH: loop header
LB: loop body
LE: loop exit
PB: predicated region body
PF: predicated region fallthrough
CT: control target
= control target key end

     0   :  { %8 = vsyncpa [#allocation3], 0  ;;  %s704_s0 = inlined_call_operand.vmem [shape: f32[2,4,8,128], index: 0, kind: input, shape index: {}]   ;;  %s705_s1 = inlined_call_operand.vmem [shape: f32[4,4], index: 1, kind: input, shape index: {}]   ;;  %s706_s2 = inlined_call_operand.vmem [shape: f32[4], index: 2, kind: input, shape index: {}]   ;;  %s707_s3 = inlined_call_operand.vmem [shape: f32[2,4,8,128], index: 3, kind: output, shape index: {}]  }
   0x1   :  { %9 = vsyncpa [#allocation5], 0  ;;  %s591_s12 = smov 0   ;;  %s593_s13 = smov 0  }
   0x2   :  { %s595_s14 = smov 0  }
   0x3 LB: > { %s421_s15 = sadd.s32 4294967295, %s567_s14   ;;  %s27_s16 = sadd.s32 1, %s563_s13  ;;  %s567_s14 = sphi %s595_s14, %s15_s14   ;;  %s563_s13 = sphi %s593_s13, %s717_s13   ;;  %s559_s12 = sphi %s591_s12, %s716_s12  }
   0x4   : > { %p29_p0 = scmp.ge.s32.totalorder %s27_s16, 2  ;;  %p423_p1 = scmp.ge.s32.totalorder %s567_s14, 1 }
   0x5   : > { %p130_p2 = scmp.lt.s32.totalorder %s567_s14, 3  ;;  %p616_p4 = scmp.eq.s32.totalorder %s421_s15, 0 }
   0x6   : > { %s719_s16 = smov (%p29_p0, %s27_s16), 0  ;;  %s143_s21 = sshll.u32 %s705_s1, 4  ;;  %s144_s21 = int_to_ptr.vmem [resolvable:$true] %s143_s21 }
   0x7   : > { %p612_p3 = pnand %p423_p1, %p130_p2  ;;  %s154_s24 = sshll.u32 %s706_s2, 4  ;;  %s155_s24 = int_to_ptr.vmem [resolvable:$true] %s154_s24 }
   0x8   : > { %s712_s18 = scalar_select %p616_p4, 1, 0 }
   0x9   : > { %s711_s17 = scalar_select %p612_p3, 1, 0 }
   0xa   : > { %p470_p5 = pneg %p612_p3  ;;  %s507_s26 = scalar_lea.vmem %s144_s21, 64 }
   0xb   : > { %p508_p7 = scmp.ne.s32.totalorder %s144_s21, %s507_s26  ;;  %p515_p11 = scmp.lt.s32.totalorder %s144_s21, %s144_s21 }
   0xc   : > { %p630_p6 = pnand %p616_p4, %p470_p5  ;;  %p516_p12 = scmp.lt.s32.totalorder %s507_s26, %s507_s26 }
   0xe   : > { %p509_p8 = pneg %p630_p6  ;;  %p517_p13 = por %p516_p12, %p515_p11 }
  0x10   : > { %p510_p9 = pnand %p509_p8, %p508_p7 }
  0x12   : > { %p511_p10 = pneg %p510_p9 }
  0x14   : > { %p518_p0 = pnand %p517_p13, %p511_p10 }
  0x16   : > { %521 = shalt.err (!%p518_p0)
}
  0x17   : > { %s569_s27 = smov [#allocation2]   ;;  %s522_s28 = scalar_lea.vmem %s155_s24, 16 }
  0x18   : > { %473 = dma.vmem_to_smem (!%p630_p6), %s144_s21, 64, %s569_s27, [#allocation3]  }
  0x19   : > { %p523_p1 = scmp.ne.s32.totalorder %s155_s24, %s522_s28  ;;  %p530_p4 = scmp.lt.s32.totalorder %s155_s24, %s155_s24 }
  0x1a   : > { %p531_p3 = scmp.lt.s32.totalorder %s522_s28, %s522_s28 }
  0x1b   : > { %p525_p2 = pnand %p523_p1, %p509_p8 }
  0x1c   : > { %p532_p7 = por %p531_p3, %p530_p4 }
  0x1d   : > { %p526_p5 = pneg %p525_p2 }
  0x1f   : > { %p533_p9 = pnand %p532_p7, %p526_p5 }
  0x21   : > { %536 = shalt.err (!%p533_p9)
}
  0x22   : > { %s570_s29 = smov [#allocation4]   ;;  %p714_p10 = scmp.ne.s32.totalorder %s711_s17, 0 }
  0x23   : > { %476 = dma.vmem_to_smem (!%p630_p6), %s155_s24, 16, %s570_s29, [#allocation5]  }
  0x24   : > { %178 = sbr.rel (%p714_p10) target bundleno = 77 (0x4d), region = 32  ;;  %p715_p11 = scmp.ne.s32.totalorder (!%p714_p10), %s712_s18, 0 }
  0x2b   : > { %550 = dma.done.wait (%p715_p11), [#allocation3], 64  }
  0x2c   : > { %552 = vsyncadd (%p715_p11), [#allocation3], 4294967232 }
  0x2d   : > { %554 = dma.done.wait (%p715_p11), [#allocation5], 16  }
  0x2e   : > { %556 = vsyncadd (%p715_p11), [#allocation5], 4294967280 }
  0x2f   : > { %188 = sfence }
  0x30   : > { %p213_p3 = scmp.lt.s32.totalorder %s559_s12, 1  ;;  %s236_s30 = sld [smem:[#allocation2]] }
  0x31   : > { %s437_s4 = sld [smem:[#allocation2 + $0x1]]  ;;  %s438_s5 = sld [smem:[#allocation2 + $0x2]] }
  0x32   : > { %s721_s12 = smov (!%p213_p3, %s559_s12), 1  ;;  %s439_s6 = sld [smem:[#allocation2 + $0x3]] }
  0x33   : > { %s460_s7 = sshll.u32 %s721_s12, 5  ;;  %s440_s8 = sld [smem:[#allocation2 + $0x80]] }
  0x34   : > { %s220_s11 = scalar_lea.vmem %s704_s0, %s460_s7  ;;  %s660_s15 = sld [smem:[#allocation4]] }
  0x35   : > { %v229_v0 = vld [vmem:[%s220_s11] sm:$0xff]  ;;  %v434_v1 = vld [vmem:[%s220_s11 + $0x8] sm:$0xff]  ;;  %v435_v2 = vld [vmem:[%s220_s11 + $0x10] sm:$0xff]  ;;  %s441_s17 = sld [smem:[#allocation2 + $0x81]]  ;;  %s442_s18 = sld [smem:[#allocation2 + $0x82]] }
  0x36   : > { %v237_v3 = vstv %s236_s30  ;;  %v436_v4 = vld [vmem:[%s220_s11 + $0x18] sm:$0xff]  ;;  %s443_s19 = sld [smem:[#allocation2 + $0x83]]  ;;  %s662_s20 = sld [smem:[#allocation4 + $0x1]] }
  0x37   : > { %v238_v5 = vmul.f32 %v237_v3, %v229_v0  ;;  %v240_v6 = vstv %s437_s4  ;;  %v244_v7 = vstv %s438_s5  ;;  %s446_s21 = sld [smem:[#allocation2 + $0x100]]  ;;  %s447_s22 = sld [smem:[#allocation2 + $0x101]] }
  0x38   : > { %v241_v8 = vmul.f32 %v434_v1, %v240_v6  ;;  %v245_v9 = vmul.f32 %v435_v2, %v244_v7  ;;  %v248_v10 = vstv %s439_s6  ;;  %s448_s23 = sld [smem:[#allocation2 + $0x102]]  ;;  %s664_s24 = sld [smem:[#allocation2 + $0x103]] }
  0x39   : > { %v249_v12 = vmul.f32 %v436_v4, %v248_v10  ;;  %v256_v13 = vstv %s440_s8  ;;  %s666_s25 = sld [smem:[#allocation2 + $0x180]]  ;;  %s668_s26 = sld [smem:[#allocation2 + $0x181]] }
  0x3a   : > { %v242_v11 = vadd.f32 %v241_v8, %v238_v5  ;;  %v257_v14 = vmul.f32 %v256_v13, %v229_v0  ;;  %s670_s27 = sld [smem:[#allocation2 + $0x182]]  ;;  %s672_s28 = sld [smem:[#allocation2 + $0x183]]  ;;  %v252_v17 = vstv %s660_s15 }
  0x3b   : > { %v259_v16 = vstv %s441_s17  ;;  %v263_v19 = vstv %s442_s18  ;;  %s675_s29 = sld [smem:[#allocation4 + $0x2]]  ;;  %s682_s5 = scalar_lea.vmem %s707_s3, %s460_s7 }
  0x3c   : > { %v246_v15 = vadd.f32 %v245_v9, %v242_v11  ;;  %v260_v18 = vmul.f32 %v434_v1, %v259_v16  ;;  %v267_v20 = vstv %s443_s19  ;;  %v264_v22 = vmul.f32 %v435_v2, %v263_v19  ;;  %s456_s6 = sld [smem:[#allocation4 + $0x3]] }
  0x3d   : > { %v268_v23 = vmul.f32 %v436_v4, %v267_v20  ;;  %v276_v25 = vstv %s446_s21  ;;  %v279_v26 = vstv %s447_s22  ;;  %v271_v33 = vstv %s662_s20 }
  0x3e   : > { %v250_v21 = vadd.f32 %v249_v12, %v246_v15  ;;  %v261_v24 = vadd.f32 %v260_v18, %v257_v14  ;;  %v283_v27 = vstv %s448_s23  ;;  %v277_v29 = vmul.f32 %v276_v25, %v229_v0 }
  0x3f   : > { %v280_v30 = vmul.f32 %v434_v1, %v279_v26  ;;  %v284_v31 = vmul.f32 %v435_v2, %v283_v27  ;;  %v287_v34 = vstv %s664_s24  ;;  %v296_v35 = vstv %s666_s25 }
  0x40   : > { %v253_v28 = vadd.f32 %v252_v17, %v250_v21  ;;  %v265_v32 = vadd.f32 %v264_v22, %v261_v24  ;;  %v288_v37 = vmul.f32 %v436_v4, %v287_v34  ;;  %v297_v38 = vmul.f32 %v296_v35, %v229_v0 }
  0x41   : > { %v281_v36 = vadd.f32 %v280_v30, %v277_v29  ;;  %v299_v39 = vstv %s668_s26  ;;  %v303_v42 = vstv %s670_s27  ;;  %v307_v43 = vstv %s672_s28 }
  0x42   : > { %254 = vst [vmem:[%s682_s5] sm:$0xff] %v253_v28  ;;  %v269_v40 = vadd.f32 %v268_v23, %v265_v32  ;;  %v300_v41 = vmul.f32 %v434_v1, %v299_v39  ;;  %v304_v45 = vmul.f32 %v435_v2, %v303_v42  ;;  %v291_v47 = vstv %s675_s29 }
  0x43   : > { %v285_v44 = vadd.f32 %v284_v31, %v281_v36  ;;  %v308_v49 = vmul.f32 %v436_v4, %v307_v43  ;;  %v311_v53 = vstv %s456_s6 }
  0x44   : > { %v272_v46 = vadd.f32 %v271_v33, %v269_v40  ;;  %v301_v48 = vadd.f32 %v300_v41, %v297_v38 }
  0x45   : > { %v289_v50 = vadd.f32 %v288_v37, %v285_v44 }
  0x46   : > { %445 = vst [vmem:[%s682_s5 + $0x8] sm:$0xff] %v272_v46  ;;  %v305_v51 = vadd.f32 %v304_v45, %v301_v48 }
  0x47   : > { %v292_v52 = vadd.f32 %v291_v47, %v289_v50 }
  0x48   : > { %v309_v54 = vadd.f32 %v308_v49, %v305_v51 }
  0x49   : > { %451 = vst [vmem:[%s682_s5 + $0x10] sm:$0xff] %v292_v52 }
  0x4a   : > { %v312_v55 = vadd.f32 %v311_v53, %v309_v54 }
  0x4c   : > { %457 = vst [vmem:[%s682_s5 + $0x18] sm:$0xff] %v312_v55 }
  0x4d PF: > { %s15_s14 = sadd.s32 1, %s567_s14   ;;  %s716_s12 = smov %s563_s13 }
  0x4e   : > { %p12_p4 = scmp.ge.s32.totalorder %s15_s14, 4   ;;  %s717_s13 = smov %s719_s16 }
  0x50   :  { %14 = sbr.rel (!%p12_p4) target bundleno = 3 (0x3), region = 77 }
  0x57   :  { %342 = vsyncpa [#allocation3], 1 }
  0x58   :  { %344 = vsyncpa [#allocation3 + $0x1], 1 }
  0x59   :  { %345 = vsyncpa [#allocation5], 1 }

// kernel: reverse.0
= control target key start
LH: loop header
LB: loop body
LE: loop exit
PB: predicated region body
PF: predicated region fallthrough
CT: control target
= control target key end

     0   :  { %v71_v3 = vlaneseq  ;;  %v64_v9 = vld [vmem:[#allocation0 + $0x7] ss:$-1 sm:$0xff]  ;;  %v78_v12 = vld [vmem:[#allocation0 + $0x17] ss:$-1 sm:$0xff]  ;;  %s329_s0 = inlined_call_operand.vmem [shape: f32[2,4,16,7], index: 0, kind: input, shape index: {}]   ;;  %s330_s1 = inlined_call_operand.vmem [shape: f32[2,4,16,7], index: 1, kind: output, shape index: {}]  }
   0x1   :  { %v44_v0 = vld [vmem:[%s329_s0] sm:$0xff]  ;;  %v46_v1 = vld [vmem:[%s329_s0 + $0x8] sm:$0xff]  ;;  %v48_v2 = vld [vmem:[%s329_s0 + $0x10] sm:$0xff]  ;;  %v65_v10 = vrot.slane %v64_v9, 1  ;;  %v79_v14 = vrot.slane %v78_v12, 1 }
   0x2   :  { %45 = vst [vmem:[#allocation0 + $0x8] sm:$0xff] %v44_v0  ;;  %47 = vst [vmem:[#allocation0 + $0x18] sm:$0xff] %v46_v1  ;;  %v50_v4 = vld [vmem:[%s329_s0 + $0x18] sm:$0xff]  ;;  %v52_v5 = vld [vmem:[%s329_s0 + $0x20] sm:$0xff]  ;;  %v72_v11 = vshrl.u32 %v71_v3, 7 }
   0x3   :  { %49 = vst [vmem:[#allocation0 + $0x28] sm:$0xff] %v48_v2  ;;  %v54_v6 = vld [vmem:[%s329_s0 + $0x28] sm:$0xff]  ;;  %51 = vst [vmem:[#allocation0 + $0x38] sm:$0xff] %v50_v4  ;;  %v56_v7 = vld [vmem:[%s329_s0 + $0x30] sm:$0xff] }
   0x4   :  { %53 = vst [vmem:[#allocation0 + $0x48] sm:$0xff] %v52_v5  ;;  %55 = vst [vmem:[#allocation0 + $0x58] sm:$0xff] %v54_v6  ;;  %v58_v8 = vld [vmem:[%s329_s0 + $0x38] sm:$0xff]  ;;  %v92_v13 = vld [vmem:[#allocation0 + $0x27] ss:$-1 sm:$0xff]  ;;  %vm73_vm0 = vcmp.lt.s32.totalorder %v72_v11, 7 }
   0x5   :  { %57 = vst [vmem:[#allocation0 + $0x68] sm:$0xff] %v56_v7  ;;  %59 = vst [vmem:[#allocation0 + $0x78] sm:$0xff] %v58_v8  ;;  %v93_v15 = vrot.slane %v92_v13, 1  ;;  %v106_v16 = vld [vmem:[#allocation0 + $0x37] ss:$-1 sm:$0xff] }
   0x6   :  { %66 = vst [vmem:[#allocation1] sm:$0xff] %v65_v10  ;;  %v107_v17 = vrot.slane %v106_v16, 1  ;;  %v120_v18 = vld [vmem:[#allocation0 + $0x47] ss:$-1 sm:$0xff]  ;;  %v134_v19 = vld [vmem:[#allocation0 + $0x57] ss:$-1 sm:$0xff] }
   0x7   :  { %80 = vst [vmem:[#allocation1 + $0x8] sm:$0xff] %v79_v14  ;;  %94 = vst [vmem:[#allocation1 + $0x10] sm:$0xff] %v93_v15  ;;  %v121_v20 = vrot.slane %v120_v18, 1  ;;  %v135_v21 = vrot.slane %v134_v19, 1  ;;  %v148_v22 = vld [vmem:[#allocation0 + $0x67] ss:$-1 sm:$0xff] }
   0x8   :  { %v162_v23 = vld [vmem:[#allocation0 + $0x77] ss:$-1 sm:$0xff]  ;;  %108 = vst [vmem:[#allocation1 + $0x18] sm:$0xff] %v107_v17  ;;  %v149_v24 = vrot.slane %v148_v22, 1 }
   0x9   :  { %v163_v25 = vrot.slane %v162_v23, 1  ;;  %v69_v26 = vld [vmem:[#allocation0 + $0xf] ss:$-1 sm:$0xff]  ;;  %v83_v27 = vld [vmem:[#allocation0 + $0x1f] ss:$-1 sm:$0xff]  ;;  %122 = vst [vmem:[#allocation1 + $0x20] sm:$0xff] %v121_v20 }
   0xa   :  { %v97_v28 = vld [vmem:[#allocation0 + $0x2f] ss:$-1 sm:$0xff]  ;;  %136 = vst [vmem:[#allocation1 + $0x28] sm:$0xff] %v135_v21  ;;  %v70_v29 = vrot.slane %v69_v26, 1  ;;  %v84_v30 = vrot.slane %v83_v27, 1  ;;  %150 = vst [vmem:[#allocation1 + $0x30] sm:$0xff] %v149_v24 }
   0xb   :  { %v98_v31 = vrot.slane %v97_v28, 1  ;;  %v111_v32 = vld [vmem:[#allocation0 + $0x3f] ss:$-1 sm:$0xff]  ;;  %164 = vst [vmem:[#allocation1 + $0x38] sm:$0xff] %v163_v25  ;;  %v125_v34 = vld [vmem:[#allocation0 + $0x4f] ss:$-1 sm:$0xff] }
   0xc   :  { %v112_v33 = vrot.slane %v111_v32, 1  ;;  %v139_v35 = vld [vmem:[#allocation0 + $0x5f] ss:$-1 sm:$0xff]  ;;  %74 = vst.msk [vmem:[#allocation1] sm:$0xff] %vm73_vm0, %v70_v29  ;;  %88 = vst.msk [vmem:[#allocation1 + $0x8] sm:$0xff] %vm73_vm0, %v84_v30  ;;  %v126_v36 = vrot.slane %v125_v34, 1 }
   0xd   :  { %102 = vst.msk [vmem:[#allocation1 + $0x10] sm:$0xff] %vm73_vm0, %v98_v31  ;;  %v140_v37 = vrot.slane %v139_v35, 1  ;;  %v153_v38 = vld [vmem:[#allocation0 + $0x6f] ss:$-1 sm:$0xff]  ;;  %v167_v39 = vld [vmem:[#allocation0 + $0x7f] ss:$-1 sm:$0xff] }
   0xe   :  { %116 = vst.msk [vmem:[#allocation1 + $0x18] sm:$0xff] %vm73_vm0, %v112_v33  ;;  %v154_v40 = vrot.slane %v153_v38, 1  ;;  %v168_v41 = vrot.slane %v167_v39, 1  ;;  %130 = vst.msk [vmem:[#allocation1 + $0x20] sm:$0xff] %vm73_vm0, %v126_v36 }
   0xf   :  { %144 = vst.msk [vmem:[#allocation1 + $0x28] sm:$0xff] %vm73_vm0, %v140_v37 }
  0x10   :  { %158 = vst.msk [vmem:[#allocation1 + $0x30] sm:$0xff] %vm73_vm0, %v154_v40  ;;  %172 = vst.msk [vmem:[#allocation1 + $0x38] sm:$0xff] %vm73_vm0, %v168_v41 }
  0x13   :  { %v214_v42 = vld [vmem:[#allocation1] sm:$0xff]  ;;  %v216_v43 = vld [vmem:[#allocation1 + $0x8] sm:$0xff] }
  0x14   :  { %v218_v44 = vld [vmem:[#allocation1 + $0x10] sm:$0xff]  ;;  %215 = vst [vmem:[%s330_s1] sm:$0xff] %v214_v42  ;;  %217 = vst [vmem:[%s330_s1 + $0x8] sm:$0xff] %v216_v43 }
  0x15   :  { %219 = vst [vmem:[%s330_s1 + $0x10] sm:$0xff] %v218_v44  ;;  %v220_v45 = vld [vmem:[#allocation1 + $0x18] sm:$0xff]  ;;  %v222_v46 = vld [vmem:[#allocation1 + $0x20] sm:$0xff] }
  0x16   :  { %221 = vst [vmem:[%s330_s1 + $0x18] sm:$0xff] %v220_v45  ;;  %v224_v47 = vld [vmem:[#allocation1 + $0x28] sm:$0xff]  ;;  %223 = vst [vmem:[%s330_s1 + $0x20] sm:$0xff] %v222_v46 }
  0x17   :  { %225 = vst [vmem:[%s330_s1 + $0x28] sm:$0xff] %v224_v47  ;;  %v226_v48 = vld [vmem:[#allocation1 + $0x30] sm:$0xff]  ;;  %v228_v49 = vld [vmem:[#allocation1 + $0x38] sm:$0xff] }
  0x18   :  { %227 = vst [vmem:[%s330_s1 + $0x30] sm:$0xff] %v226_v48  ;;  %229 = vst [vmem:[%s330_s1 + $0x38] sm:$0xff] %v228_v49 }

// kernel: fre_block_forward.3
= control target key start
LH: loop header
LB: loop body
LE: loop exit
PB: predicated region body
PF: predicated region fallthrough
CT: control target
= control target key end

     0   :  { %11 = vsyncpa [#allocation3], 0  ;;  %s3429_s0 = inlined_call_operand.vmem [shape: f32[2,4,8,128], index: 0, kind: input, shape index: {}]   ;;  %s3430_s1 = inlined_call_operand.vmem [shape: f32[2,4,8,128], index: 1, kind: input, shape index: {}]   ;;  %s3431_s2 = inlined_call_operand.vmem [shape: f32[16,4], index: 2, kind: input, shape index: {}]   ;;  %s3432_s3 = inlined_call_operand.vmem [shape: f32[16], index: 3, kind: input, shape index: {}]   ;;  %s3433_s4 = inlined_call_operand.vmem [shape: f32[2,4,8,128], index: 4, kind: output, shape index: {0}]   ;;  %s3434_s5 = inlined_call_operand.vmem [shape: f32[2,4,8,128], index: 5, kind: output, shape index: {1}]  }
   0x1   :  { %12 = vsyncpa [#allocation5], 0  ;;  %s2264_s18 = smov 0   ;;  %s2266_s19 = smov 0  }
   0x2   :  { %s2268_s20 = smov 0  }
   0x3 LB: > { %s1912_s21 = sadd.s32 4294967295, %s2220_s20   ;;  %s30_s22 = sadd.s32 1, %s2216_s19  ;;  %s2220_s20 = sphi %s2268_s20, %s18_s20   ;;  %s2216_s19 = sphi %s2266_s19, %s3472_s19   ;;  %s2212_s18 = sphi %s2264_s18, %s3471_s18  }
   0x4   : > { %p32_p0 = scmp.ge.s32.totalorder %s30_s22, 2  ;;  %p1914_p1 = scmp.ge.s32.totalorder %s2220_s20, 1 }
   0x5   : > { %p189_p2 = scmp.lt.s32.totalorder %s2220_s20, 3  ;;  %p2289_p4 = scmp.eq.s32.totalorder %s1912_s21, 0 }
   0x6   : > { %s3474_s22 = smov (%p32_p0, %s30_s22), 0  ;;  %s201_s27 = sshll.u32 %s3431_s2, 4  ;;  %s202_s27 = int_to_ptr.vmem [resolvable:$true] %s201_s27 }
   0x7   : > { %p2285_p3 = pnand %p1914_p1, %p189_p2  ;;  %s215_s6 = sshll.u32 %s3432_s3, 4  ;;  %s216_s6 = int_to_ptr.vmem [resolvable:$true] %s215_s6 }
   0x8   : > { %s3441_s24 = scalar_select %p2289_p4, 1, 0 }
   0x9   : > { %s3440_s23 = scalar_select %p2285_p3, 1, 0 }
   0xa   : > { %p2081_p5 = pneg %p2285_p3  ;;  %s2160_s7 = scalar_lea.vmem %s202_s27, 256 }
   0xb   : > { %p2161_p7 = scmp.ne.s32.totalorder %s202_s27, %s2160_s7  ;;  %p2168_p11 = scmp.lt.s32.totalorder %s202_s27, %s202_s27 }
   0xc   : > { %p2300_p6 = pnand %p2289_p4, %p2081_p5  ;;  %p2169_p12 = scmp.lt.s32.totalorder %s2160_s7, %s2160_s7 }
   0xe   : > { %p2162_p8 = pneg %p2300_p6  ;;  %p2170_p13 = por %p2169_p12, %p2168_p11 }
  0x10   : > { %p2163_p9 = pnand %p2162_p8, %p2161_p7 }
  0x12   : > { %p2164_p10 = pneg %p2163_p9 }
  0x14   : > { %p2171_p0 = pnand %p2170_p13, %p2164_p10 }
  0x16   : > { %2174 = shalt.err (!%p2171_p0)
}
  0x17   : > { %s2222_s8 = smov [#allocation2]   ;;  %s2223_s9 = smov 128  }
  0x18   : > { %s2224_s10 = smov 8   ;;  %s2175_s11 = scalar_lea.vmem %s216_s6, 16 }
  0x19   : > { %2084 = dma.vmem_to_smem (!%p2300_p6), %s202_s27, 256, %s2222_s8, [#allocation3], %s2223_s9, %s2223_s9, %s2224_s10  }
  0x1a   : > { %p2176_p1 = scmp.ne.s32.totalorder %s216_s6, %s2175_s11  ;;  %p2183_p7 = scmp.lt.s32.totalorder %s216_s6, %s216_s6 }
  0x1b   : > { %p2184_p9 = scmp.lt.s32.totalorder %s2175_s11, %s2175_s11 }
  0x1c   : > { %p2178_p2 = pnand %p2176_p1, %p2162_p8 }
  0x1d   : > { %p2185_p4 = por %p2184_p9, %p2183_p7 }
  0x1e   : > { %p2179_p5 = pneg %p2178_p2 }
  0x20   : > { %p2186_p3 = pnand %p2185_p4, %p2179_p5 }
  0x22   : > { %2189 = shalt.err (!%p2186_p3)
}
  0x23   : > { %s2225_s12 = smov [#allocation4]   ;;  %p3443_p10 = scmp.ne.s32.totalorder %s3440_s23, 0 }
  0x24   : > { %2087 = dma.vmem_to_smem (!%p2300_p6), %s216_s6, 16, %s2225_s12, [#allocation5]  }
  0x25   : > { %250 = sbr.rel (%p3443_p10) target bundleno = 315 (0x13b), region = 36  ;;  %p3444_p11 = scmp.ne.s32.totalorder (!%p3443_p10), %s3441_s24, 0 }
  0x2c   : > { %2203 = dma.done.wait (%p3444_p11), [#allocation3], 256  }
  0x2d   : > { %2205 = vsyncadd (%p3444_p11), [#allocation3], 4294967040 }
  0x2e   : > { %2207 = dma.done.wait (%p3444_p11), [#allocation5], 16  }
  0x2f   : > { %2209 = vsyncadd (%p3444_p11), [#allocation5], 4294967280 }
  0x30   : > { %260 = sfence }
  0x31   : > { %p305_p3 = scmp.lt.s32.totalorder %s2212_s18, 1  ;;  %v2226_v24 = vmov 0.0   ;;  %v2227_v28 = vmov 0.7853982   ;;  %s2459_s24 = sld [smem:[#allocation2 + $0x1]] }
  0x32   : > { %s2461_s25 = sld [smem:[#allocation2 + $0x2]]  ;;  %s2486_s26 = sld [smem:[#allocation2 + $0x3]] }
  0x33   : > { %s3476_s18 = smov (!%p305_p3, %s2212_s18), 1  ;;  %s2492_s27 = sld [smem:[#allocation2 + $0x80]] }
  0x34   : > { %s2331_s13 = sshll.u32 %s3476_s18, 5  ;;  %s2372_s18 = sld [smem:[#allocation2]] }
  0x35   : > { %s2337_s16 = scalar_lea.vmem %s3429_s0, %s2331_s13  ;;  %s2343_s23 = scalar_lea.vmem %s3430_s1, %s2331_s13 }
  0x36   : > { %v2346_v0 = vld [vmem:[%s2337_s16] sm:$0xff]  ;;  %v2366_v8 = vld [vmem:[%s2337_s16 + $0x8] sm:$0xff]  ;;  %v2389_v16 = vld [vmem:[%s2337_s16 + $0x10] sm:$0xff]  ;;  %s2499_s28 = sld [smem:[#allocation2 + $0x81]]  ;;  %s2501_s29 = sld [smem:[#allocation2 + $0x82]] }
  0x37   : > { %v2349_v1 = vld [vmem:[%s2343_s23] sm:$0xff]  ;;  %v339_v2 = vmul.f32 %v2346_v0, %v2346_v0  ;;  %v2356_v4 = vand.u32 2147483647, %v2346_v0  ;;  %v2369_v9 = vld [vmem:[%s2343_s23 + $0x8] sm:$0xff]  ;;  %v400_v10 = vmul.f32 %v2366_v8, %v2366_v8  ;;  %v2379_v12 = vand.u32 2147483647, %v2366_v8 }
  0x38   : > { %v340_v3 = vmul.f32 %v2349_v1, %v2349_v1  ;;  %v2359_v5 = vand.u32 2147483647, %v2349_v1  ;;  %v401_v11 = vmul.f32 %v2369_v9, %v2369_v9  ;;  %v2382_v13 = vand.u32 2147483647, %v2369_v9  ;;  %v2392_v17 = vld [vmem:[%s2343_s23 + $0x10] sm:$0xff]  ;;  %v2437_v37 = vld [vmem:[%s2337_s16 + $0x18] sm:$0xff] }
  0x39   : > { %vm379_vm0 = vcmp.lt.s32.totalorder %v2346_v0, 0  ;;  %v461_v18 = vmul.f32 %v2389_v16, %v2389_v16  ;;  %v462_v19 = vmul.f32 %v2392_v17, %v2392_v17  ;;  %v2403_v21 = vand.u32 2147483647, %v2389_v16  ;;  %v2440_v38 = vld [vmem:[%s2343_s23 + $0x18] sm:$0xff]  ;;  %s2525_s30 = sld [smem:[#allocation2 + $0x83]]  ;;  %s2537_s6 = sld [smem:[#allocation4]] }
  0x3a   : > { %v2361_v6 = vadd.f32 %v340_v3, %v339_v2  ;;  %v352_v7 = vmax.f32 %v2356_v4, %v2359_v5  ;;  %v2384_v14 = vadd.f32 %v401_v11, %v400_v10  ;;  %v413_v15 = vmax.f32 %v2379_v12, %v2382_v13  ;;  %s2556_s7 = sld [smem:[#allocation2 + $0x100]]  ;;  %s2564_s8 = sld [smem:[#allocation2 + $0x101]] }
  0x3b   : > { %v351_v20 = vmin.f32 %v2356_v4, %v2359_v5  ;;  %v2406_v22 = vand.u32 2147483647, %v2392_v17  ;;  %v580_v23 = vstv %s2372_s18  ;;  %vm376_vm1 = vcmp.lt.f32.partialorder %v2346_v0, 0.0  ;;  %s2569_s9 = sld [smem:[#allocation4 + $0x1]]  ;;  %s2575_s10 = sld [smem:[#allocation2 + $0x102]] }
  0x3c   : > { %2128 = vrsqrt.f32 %v2361_v6  ;;  %v2411_v25 = vsel %vm379_vm0, 3.1415927, %v2226_v24  ;;  %vm440_vm2 = vcmp.lt.s32.totalorder %v2366_v8, 0  ;;  %v2414_v26 = vadd.f32 %v462_v19, %v461_v18  ;;  %s2582_s11 = sld [smem:[#allocation2 + $0x103]]  ;;  %s2595_s12 = sld [smem:[#allocation4 + $0x2]] }
  0x3d   : > { %2130 = vrcp.f32 %v352_v7  ;;  %vm344_vm3 = vcmp.eq.f32.partialorder %v2361_v6, inf  ;;  %vm346_vm4 = vcmp.eq.f32.partialorder %v2361_v6, 0.0  ;;  %v2421_v29 = vsel %vm376_vm1, 2.3561945, %v2227_v28  ;;  %s2597_s14 = sld [smem:[#allocation2 + $0x180]]  ;;  %s2604_s15 = sld [smem:[#allocation2 + $0x181]] }
  0x3e   : > { %2132 = vrsqrt.f32 %v2384_v14  ;;  %v474_v30 = vmax.f32 %v2403_v21, %v2406_v22  ;;  %v347_v32 = vand.u32 2147483648, %v2361_v6  ;;  %v394_v33 = vand.u32 2147483648, %v2349_v1  ;;  %s2606_s16 = sld [smem:[#allocation2 + $0x182]]  ;;  %s2614_s17 = sld [smem:[#allocation2 + $0x183]] }
  0x3f   : > { %2134 = vrcp.f32 %v413_v15  ;;  %vm3439_vm5 = vcmp.lt.f32.partialorder %v2366_v8, 0.0  ;;  %v412_v35 = vmin.f32 %v2379_v12, %v2382_v13  ;;  %v2434_v36 = vsel %vm440_vm2, 3.1415927, %v2226_v24  ;;  %s2622_s21 = sld [smem:[#allocation4 + $0x3]]  ;;  %s2654_s23 = sld [smem:[#allocation2 + $0x200]] }
  0x40   : > { %2136 = vrsqrt.f32 %v2414_v26  ;;  %vm405_vm6 = vcmp.eq.f32.partialorder %v2384_v14, inf  ;;  %v2447_v40 = vsel %vm3439_vm5, 2.3561945, %v2227_v28  ;;  %vm501_vm7 = vcmp.lt.s32.totalorder %v2389_v16, 0  ;;  %s2656_s18 = sld [smem:[#allocation2 + $0x201]] }
  0x41   : > { %2138 = vrcp.f32 %v474_v30  ;;  %vm407_vm8 = vcmp.eq.f32.partialorder %v2384_v14, 0.0  ;;  %v522_v42 = vmul.f32 %v2437_v37, %v2437_v37  ;;  %v523_v43 = vmul.f32 %v2440_v38, %v2440_v38 }
  0x42   : > { %v408_v44 = vand.u32 2147483648, %v2384_v14  ;;  %v455_v45 = vand.u32 2147483648, %v2369_v9  ;;  %v2466_v46 = vand.u32 2147483647, %v2437_v37  ;;  %v2469_v47 = vand.u32 2147483647, %v2440_v38 }
  0x43   : > { %vm3438_vm9 = vcmp.lt.f32.partialorder %v2389_v16, 0.0  ;;  %v2474_v50 = vsel %vm501_vm7, 3.1415927, %v2226_v24  ;;  %v2476_v51 = vadd.f32 %v523_v43, %v522_v42  ;;  %v473_v55 = vmin.f32 %v2403_v21, %v2406_v22 }
  0x44   : > { %v535_v56 = vmax.f32 %v2466_v46, %v2469_v47  ;;  %vm466_vm10 = vcmp.eq.f32.partialorder %v2414_v26, inf  ;;  %vm468_vm11 = vcmp.eq.f32.partialorder %v2414_v26, 0.0  ;;  %v469_v60 = vand.u32 2147483648, %v2414_v26 }
  0x45   : > { %2140 = vrsqrt.f32 %v2476_v51  ;;  %v2515_v2 = vsel %vm3438_vm9, 2.3561945, %v2227_v28  ;;  %v516_v7 = vand.u32 2147483648, %v2392_v17  ;;  %vm527_vm12 = vcmp.eq.f32.partialorder %v2476_v51, inf }
  0x46   : > { %v2129_v27 = vpop.eup %2128  ;;  %2142 = vrcp.f32 %v535_v56  ;;  %v534_v10 = vmin.f32 %v2466_v46, %v2469_v47  ;;  %vm529_vm13 = vcmp.eq.f32.partialorder %v2476_v51, 0.0  ;;  %v587_v30 = vstv %s2461_s25  ;;  %s2682_s25 = sld [smem:[#allocation2 + $0x203]] }
  0x47   : > { %v2131_v31 = vpop.eup %2130  ;;  %v343_v39 = vmul.f32 %v2129_v27, %v2361_v6  ;;  %v583_v27 = vstv %s2459_s24  ;;  %v530_v43 = vand.u32 2147483648, %v2476_v51  ;;  %v605_v56 = vstv %s2501_s29  ;;  %s2669_s24 = sld [smem:[#allocation2 + $0x202]]  ;;  %s2726_s29 = sld [smem:[#allocation2 + $0x283]] }
  0x48   : > { %v2429_v34 = vmul.f32 %v2131_v31, %v351_v20  ;;  %v2133_v48 = vpop.eup %2132  ;;  %vm373_vm14 = vcmp.gt.f32.partialorder %v2359_v5, %v2356_v4  ;;  %vm562_vm15 = vcmp.lt.s32.totalorder %v2437_v37, 0  ;;  %vm381_vm0 = vcmp.eq.f32.partialorder %v2349_v1, 0.0 }
  0x49   : > { %v2135_v52 = vpop.eup %2134  ;;  %v345_v53 = vsel %vm344_vm3, %v2361_v6, %v343_v39  ;;  %v404_v54 = vmul.f32 %v2133_v48, %v2384_v14  ;;  %vm383_vm2 = vcmp.ne.f32.partialorder %v2346_v0, %v2346_v0  ;;  %vm384_vm3 = vcmp.ne.f32.partialorder %v2349_v1, %v2349_v1 }
  0x4a   : > { %v2452_v41 = vmul.f32 %v2429_v34, %v2429_v34  ;;  %v2488_v58 = vmul.f32 %v2135_v52, %v412_v35  ;;  %v2505_v61 = vsel %vm346_vm4, %v347_v32, %v345_v53  ;;  %v2137_v3 = vpop.eup %2136  ;;  %vm434_vm4 = vcmp.gt.f32.partialorder %v2382_v13, %v2379_v12 }
  0x4b   : > { %v406_v59 = vsel %vm405_vm6, %v2384_v14, %v404_v54  ;;  %v2139_v11 = vpop.eup %2138  ;;  %v465_v19 = vmul.f32 %v2137_v3, %v2414_v26  ;;  %v581_v20 = vmul.f32 %v580_v23, %v2505_v61  ;;  %vm445_vm7 = vcmp.ne.f32.partialorder %v2369_v9, %v2369_v9 }
  0x4c   : > { %v356_v49 = vmul.f32 0.002785687, %v2452_v41  ;;  %v2510_v63 = vmul.f32 %v2488_v58, %v2488_v58  ;;  %v2519_v6 = vsel %vm407_vm8, %v408_v44, %v406_v59  ;;  %v2530_v14 = vmul.f32 %v2139_v11, %v473_v55 }
  0x4d   : > { %v467_v35 = vsel %vm466_vm10, %v2414_v26, %v465_v19  ;;  %v584_v39 = vmul.f32 %v583_v27, %v2519_v6  ;;  %v591_v44 = vstv %s2486_s26  ;;  %v598_v26 = vstv %s2492_s27  ;;  %s2698_s26 = sld [smem:[#allocation2 + $0x280]]  ;;  %s2707_s27 = sld [smem:[#allocation2 + $0x281]] }
  0x4e   : > { %v357_v57 = vadd.f32 -0.015866, %v356_v49  ;;  %v417_v18 = vmul.f32 0.002785687, %v2510_v63  ;;  %v2546_v42 = vsel %vm468_vm11, %v469_v60, %v467_v35  ;;  %v2550_v23 = vmul.f32 %v2530_v14, %v2530_v14 }
  0x4f   : > { %v585_v52 = vadd.f32 %v584_v39, %v581_v20  ;;  %v588_v53 = vmul.f32 %v587_v30, %v2546_v42  ;;  %v601_v55 = vstv %s2499_s28  ;;  %v599_v3 = vmul.f32 %v598_v26, %v2505_v61  ;;  %s2724_s28 = sld [smem:[#allocation2 + $0x282]] }
  0x50   : > { %v358_v62 = vmul.f32 %v357_v57, %v2452_v41  ;;  %v418_v32 = vadd.f32 -0.015866, %v417_v18  ;;  %v478_v54 = vmul.f32 0.002785687, %v2550_v23  ;;  %v2141_v57 = vpop.eup %2140  ;;  %v602_v19 = vmul.f32 %v601_v55, %v2519_v6 }
  0x51   : > { %v2143_v11 = vpop.eup %2142  ;;  %v526_v18 = vmul.f32 %v2141_v57, %v2476_v51  ;;  %v606_v20 = vmul.f32 %v605_v56, %v2546_v42  ;;  %vm451_vm5 = vcmp.eq.s32.totalorder %v2382_v13, inf  ;;  %vm559_vm6 = vcmp.lt.f32.partialorder %v2437_v37, 0.0 }
  0x52   : > { %v359_v15 = vadd.f32 0.04247222, %v358_v62  ;;  %v419_v49 = vmul.f32 %v418_v32, %v2510_v63  ;;  %v589_v62 = vadd.f32 %v588_v53, %v585_v52  ;;  %v609_v32 = vstv %s2525_s30  ;;  %s2766_s30 = sld [smem:[#allocation2 + $0x300]] }
  0x53   : > { %v528_v39 = vsel %vm527_vm12, %v2476_v51, %v526_v18  ;;  %vm390_vm12 = vcmp.eq.s32.totalorder %v2359_v5, inf }
  0x54   : > { %v360_v31 = vmul.f32 %v359_v15, %v2452_v41  ;;  %v420_v60 = vadd.f32 0.04247222, %v419_v49  ;;  %v479_v15 = vadd.f32 -0.015866, %v478_v54  ;;  %v603_v49 = vadd.f32 %v602_v19, %v599_v3 }
  0x56   : > { %v361_v48 = vadd.f32 -0.074975304, %v360_v31  ;;  %v421_v30 = vmul.f32 %v420_v60, %v2510_v63  ;;  %v2572_v31 = vmul.f32 %v2143_v11, %v534_v10  ;;  %v480_v35 = vmul.f32 %v479_v15, %v2550_v23 }
  0x57   : > { %v2587_v10 = vsel %vm529_vm13, %v530_v43, %v528_v39  ;;  %v607_v56 = vadd.f32 %v606_v20, %v603_v49  ;;  %v616_v60 = vstv %s2556_s7  ;;  %vm506_vm13 = vcmp.ne.f32.partialorder %v2392_v17, %v2392_v17  ;;  %s2801_s7 = sld [smem:[#allocation2 + $0x302]] }
  0x58   : > { %v362_v59 = vmul.f32 %v361_v48, %v2452_v41  ;;  %v595_v48 = vstv %s2537_s6  ;;  %v422_v53 = vadd.f32 -0.074975304, %v421_v30  ;;  %v2591_v54 = vmul.f32 %v2572_v31, %v2572_v31  ;;  %s2785_s6 = sld [smem:[#allocation2 + $0x301]] }
  0x59   : > { %v481_v26 = vadd.f32 0.04247222, %v480_v35  ;;  %v592_v55 = vmul.f32 %v591_v44, %v2587_v10  ;;  %v610_v57 = vmul.f32 %v609_v32, %v2587_v10  ;;  %v617_v44 = vmul.f32 %v616_v60, %v2505_v61 }
  0x5a   : > { %v363_v27 = vadd.f32 0.1064488, %v362_v59  ;;  %v423_v51 = vmul.f32 %v422_v53, %v2510_v63  ;;  %v539_v43 = vmul.f32 0.002785687, %v2591_v54  ;;  %v613_v35 = vstv %s2569_s9  ;;  %s2835_s9 = sld [smem:[#allocation2 + $0x380]] }
  0x5b   : > { %v482_v3 = vmul.f32 %v481_v26, %v2550_v23  ;;  %v593_v11 = vadd.f32 %v592_v55, %v589_v62  ;;  %v611_v15 = vadd.f32 %v610_v57, %v607_v56  ;;  %v623_v53 = vstv %s2575_s10  ;;  %s2837_s10 = sld [smem:[#allocation2 + $0x381]] }
  0x5c   : > { %v364_v52 = vmul.f32 %v363_v27, %v2452_v41  ;;  %v424_v19 = vadd.f32 0.1064488, %v423_v51  ;;  %v540_v20 = vadd.f32 -0.015866, %v539_v43  ;;  %v619_v27 = vstv %s2564_s8  ;;  %s2811_s8 = sld [smem:[#allocation2 + $0x303]] }
  0x5d   : > { %v483_v30 = vadd.f32 -0.074975304, %v482_v3  ;;  %v2610_v32 = vadd.f32 %v595_v48, %v593_v11  ;;  %v620_v62 = vmul.f32 %v619_v27, %v2519_v6  ;;  %v624_v56 = vmul.f32 %v623_v53, %v2546_v42 }
  0x5e   : > { %v365_v59 = vadd.f32 -0.14207031, %v364_v52  ;;  %v425_v49 = vmul.f32 %v424_v19, %v2510_v63  ;;  %v541_v52 = vmul.f32 %v540_v20, %v2591_v54  ;;  %v627_v48 = vstv %s2582_s11  ;;  %s2852_s11 = sld [smem:[#allocation2 + $0x382]] }
  0x5f   : > { %v484_v26 = vmul.f32 %v483_v30, %v2550_v23  ;;  %v621_v55 = vadd.f32 %v620_v62, %v617_v44  ;;  %v628_v43 = vmul.f32 %v627_v48, %v2587_v10  ;;  %v631_v11 = vstv %s2595_s12  ;;  %s2854_s12 = sld [smem:[#allocation2 + $0x383]] }
  0x60   : > { %v366_v18 = vmul.f32 %v365_v59, %v2452_v41  ;;  %v426_v59 = vadd.f32 -0.14207031, %v425_v49  ;;  %v542_v51 = vadd.f32 0.04247222, %v541_v52  ;;  %v634_v44 = vstv %s2597_s14  ;;  %s2862_s14 = sld [smem:[#allocation2 + $0x400]] }
  0x61   : > { %v485_v60 = vadd.f32 0.1064488, %v484_v26  ;;  %v625_v3 = vadd.f32 %v624_v56, %v621_v55  ;;  %v635_v27 = vmul.f32 %v634_v44, %v2505_v61  ;;  %v641_v49 = vstv %s2606_s16  ;;  %s2875_s16 = sld [smem:[#allocation2 + $0x402]] }
  0x62   : > { %v367_v39 = vadd.f32 0.19993454, %v366_v18  ;;  %v427_v19 = vmul.f32 %v426_v59, %v2510_v63  ;;  %v543_v20 = vmul.f32 %v542_v51, %v2591_v54  ;;  %v614_v48 = vadd.f32 %v613_v35, %v611_v15 }
  0x63   : > { %v486_v30 = vmul.f32 %v485_v60, %v2550_v23  ;;  %v629_v62 = vadd.f32 %v628_v43, %v625_v3  ;;  %v645_v59 = vstv %s2614_s17  ;;  %v649_v35 = vstv %s2622_s21  ;;  %s2877_s17 = sld [smem:[#allocation2 + $0x403]]  ;;  %s2895_s21 = sld [smem:[#allocation2 + $0x480]] }
  0x64   : > { %v368_v57 = vmul.f32 %v367_v39, %v2452_v41  ;;  %v637_v39 = vstv %s2604_s15  ;;  %v428_v53 = vadd.f32 0.19993454, %v427_v19  ;;  %v544_v26 = vadd.f32 -0.074975304, %v543_v20  ;;  %s2864_s15 = sld [smem:[#allocation2 + $0x401]] }
  0x65   : > { %v638_v55 = vmul.f32 %v637_v39, %v2519_v6  ;;  %v487_v56 = vadd.f32 -0.14207031, %v486_v30  ;;  %v646_v15 = vmul.f32 %v645_v59, %v2587_v10  ;;  %vm651_vm8 = vcmp.ge.f32.partialorder %v2610_v32, 0.0 }
  0x66   : > { %v369_v18 = vadd.f32 -0.33333147, %v368_v57  ;;  %v642_v57 = vmul.f32 %v641_v49, %v2546_v42  ;;  %v429_v51 = vmul.f32 %v428_v53, %v2510_v63  ;;  %v632_v42 = vadd.f32 %v631_v11, %v629_v62 }
  0x67   : > { %v639_v43 = vadd.f32 %v638_v55, %v635_v27  ;;  %v488_v6 = vmul.f32 %v487_v56, %v2550_v23  ;;  %v652_v10 = vmul.f32 0.1, %v2610_v32  ;;  %vm654_vm10 = vcmp.ge.f32.partialorder %v614_v48, 0.0 }
  0x68   : > { %v370_v52 = vmul.f32 %v369_v18, %v2452_v41  ;;  %v545_v41 = vmul.f32 %v544_v26, %v2591_v54  ;;  %v430_v3 = vadd.f32 -0.33333147, %v429_v51  ;;  %v655_v62 = vmul.f32 0.1, %v614_v48 }
  0x69   : > { %v643_v18 = vadd.f32 %v642_v57, %v639_v43  ;;  %v489_v19 = vadd.f32 0.19993454, %v488_v6  ;;  %vm657_vm11 = vcmp.ge.f32.partialorder %v632_v42, 0.0  ;;  %v658_v39 = vmul.f32 0.1, %v632_v42 }
  0x6a   : > { %v371_v61 = vmul.f32 %v370_v52, %v2429_v34  ;;  %v546_v44 = vadd.f32 0.1064488, %v545_v41  ;;  %v2687_v56 = vsel %vm651_vm8, %v2610_v32, %v652_v10  ;;  %v2690_v57 = vsel %vm654_vm10, %v614_v48, %v655_v62 }
  0x6b   : > { %v647_v27 = vadd.f32 %v646_v15, %v643_v18  ;;  %v490_v30 = vmul.f32 %v489_v19, %v2550_v23  ;;  %vm511_vm8 = vcmp.eq.s32.totalorder %v2403_v21, inf  ;;  %vm512_vm10 = vcmp.eq.s32.totalorder %v2406_v22, inf }
  0x6c   : > { %v372_v60 = vadd.f32 %v371_v61, %v2429_v34  ;;  %v431_v34 = vmul.f32 %v430_v3, %v2510_v63  ;;  %v547_v20 = vmul.f32 %v546_v44, %v2591_v54  ;;  %v667_v41 = vstv %s2656_s18  ;;  %s2915_s18 = sld [smem:[#allocation2 + $0x482]] }
  0x6d   : > { %v650_v53 = vadd.f32 %v649_v35, %v647_v27  ;;  %v491_v55 = vadd.f32 -0.33333147, %v490_v30  ;;  %v2713_v15 = vsel %vm562_vm15, 3.1415927, %v2226_v24  ;;  %v668_v44 = vmul.f32 %v667_v41, %v2690_v57 }
  0x6e   : > { %v374_v11 = vsub.f32 1.5707964, %v372_v60  ;;  %v432_v49 = vmul.f32 %v431_v34, %v2488_v58  ;;  %v548_v52 = vadd.f32 -0.14207031, %v547_v20  ;;  %v671_v19 = vstv %s2669_s24  ;;  %s2922_s24 = sld [smem:[#allocation4 + $0x8]] }
  0x6f   : > { %vm660_vm9 = vcmp.ge.f32.partialorder %v650_v53, 0.0  ;;  %v661_v51 = vmul.f32 0.1, %v650_v53  ;;  %v492_v48 = vmul.f32 %v491_v55, %v2550_v23  ;;  %v2716_v23 = vsel %vm657_vm11, %v632_v42, %v658_v39 }
  0x70   : > { %v375_v63 = vsel %vm373_vm14, %v374_v11, %v372_v60  ;;  %v433_v59 = vadd.f32 %v432_v49, %v2488_v58  ;;  %v549_v61 = vmul.f32 %v548_v52, %v2591_v54  ;;  %v664_v58 = vstv %s2654_s23  ;;  %s2913_s23 = sld [smem:[#allocation2 + $0x481]] }
  0x71   : > { %v377_v26 = vsub.f32 3.1415927, %v375_v63  ;;  %vm503_vm14 = vcmp.eq.f32.partialorder %v2392_v17, 0.0  ;;  %v493_v60 = vmul.f32 %v492_v48, %v2530_v14  ;;  %v665_v3 = vmul.f32 %v664_v58, %v2687_v56 }
  0x72   : > { %v435_v43 = vsub.f32 1.5707964, %v433_v59  ;;  %v550_v6 = vadd.f32 0.19993454, %v549_v61  ;;  %v2743_v18 = vsel %vm660_vm9, %v650_v53, %v661_v51  ;;  %vm556_vm15 = vcmp.gt.f32.partialorder %v2469_v47, %v2466_v46 }
  0x73   : > { %v378_v32 = vsel %vm376_vm1, %v377_v26, %v375_v63  ;;  %vm2734_vm1 = vmor %vm383_vm2, %vm384_vm3  ;;  %v494_v11 = vadd.f32 %v493_v60, %v2530_v14  ;;  %v669_v0 = vadd.f32 %v668_v44, %v665_v3  ;;  %v2762_v27 = vsel %vm559_vm6, 2.3561945, %v2227_v28 }
  0x74   : > { %v382_v35 = vsel %vm381_vm0, %v2411_v25, %v378_v32  ;;  %v436_v25 = vsel %vm434_vm4, %v435_v43, %v433_v59  ;;  %v551_v42 = vmul.f32 %v550_v6, %v2591_v54  ;;  %vm3447_vm0 = vcmp.ne.f32.partialorder %v2366_v8, %v2366_v8 }
  0x75   : > { %v438_v10 = vsub.f32 3.1415927, %v436_v25  ;;  %vm2755_vm2 = vmor %vm3447_vm0, %vm445_vm7  ;;  %v672_v14 = vmul.f32 %v671_v19, %v2716_v23  ;;  %v675_v30 = vstv %s2682_s25  ;;  %v386_v62 = vsel %vm2734_vm1, nan, %v382_v35  ;;  %s2924_s25 = sld [smem:[#allocation2 + $0x483]] }
  0x76   : > { %v552_v20 = vadd.f32 -0.33333147, %v551_v42  ;;  %vm3450_vm9 = vcmp.eq.s32.totalorder %v2356_v4, inf  ;;  %vm3453_vm4 = vcmp.lt.f32.partialorder %v2366_v8, 0.0  ;;  %v496_v63 = vsub.f32 1.5707964, %v494_v11 }
  0x77   : > { %vm2774_vm3 = vmand %vm3450_vm9, %vm390_vm12  ;;  %v439_v28 = vsel %vm3453_vm4, %v438_v10, %v436_v25  ;;  %vm566_vm7 = vcmp.ne.f32.partialorder %v2437_v37, %v2437_v37  ;;  %vm567_vm11 = vcmp.ne.f32.partialorder %v2440_v38, %v2440_v38  ;;  %v676_v49 = vmul.f32 %v675_v30, %v2743_v18 }
  0x78   : > { %vm3454_vm12 = vcmp.eq.f32.partialorder %v2369_v9, 0.0  ;;  %vm3455_vm1 = vcmp.eq.s32.totalorder %v2379_v12, inf  ;;  %v553_v8 = vmul.f32 %v552_v20, %v2591_v54  ;;  %vm572_vm9 = vcmp.eq.s32.totalorder %v2466_v46, inf }
  0x79   : > { %v443_v4 = vsel %vm3454_vm12, %v2434_v36, %v439_v28  ;;  %vm2794_vm0 = vmand %vm3455_vm1, %vm451_vm5  ;;  %v673_v52 = vadd.f32 %v672_v14, %v669_v0  ;;  %v682_v53 = vstv %s2698_s26  ;;  %vm3458_vm4 = vcmp.gt.f32.partialorder %v2406_v22, %v2403_v21  ;;  %s2934_s26 = sld [smem:[#allocation2 + $0x500]] }
  0x7a   : > { %v447_v36 = vsel %vm2755_vm2, nan, %v443_v4  ;;  %v497_v12 = vsel %vm3458_vm4, %v496_v63, %v494_v11  ;;  %vm564_vm5 = vcmp.eq.f32.partialorder %v2440_v38, 0.0  ;;  %v683_v13 = vmul.f32 %v682_v53, %v2687_v56 }
  0x7b   : > { %v685_v54 = vstv %s2707_s27  ;;  %v392_v26 = vsel %vm2774_vm3, %v2421_v29, %v386_v62  ;;  %v499_v55 = vsub.f32 3.1415927, %v497_v12  ;;  %v554_v59 = vmul.f32 %v553_v8, %v2572_v31  ;;  %s2936_s27 = sld [smem:[#allocation2 + $0x501]] }
  0x7c   : > { %v2817_v61 = vadd.f32 %v676_v49, %v673_v52  ;;  %v453_v51 = vsel %vm2794_vm0, %v2447_v40, %v447_v36  ;;  %vm3459_vm2 = vcmp.ne.f32.partialorder %v2389_v16, %v2389_v16  ;;  %v686_v29 = vmul.f32 %v685_v54, %v2690_v57 }
  0x7d   : > { %vm2828_vm12 = vmor %vm3459_vm2, %vm506_vm13  ;;  %v689_v48 = vstv %s2724_s28  ;;  %v693_v58 = vstv %s2726_s29  ;;  %vm3462_vm3 = vcmp.lt.f32.partialorder %v2389_v16, 0.0  ;;  %v555_v41 = vadd.f32 %v554_v59, %v2572_v31  ;;  %s2944_s28 = sld [smem:[#allocation4 + $0x9]]  ;;  %s2949_s29 = sld [smem:[#allocation2 + $0x502]] }
  0x7e   : > { %v500_v40 = vsel %vm3462_vm3, %v499_v55, %v497_v12  ;;  %vm513_vm13 = vmand %vm511_vm8, %vm512_vm10  ;;  %vm573_vm1 = vcmp.eq.s32.totalorder %v2469_v47, inf  ;;  %v690_v43 = vmul.f32 %v689_v48, %v2716_v23  ;;  %v393_v6 = vand.u32 2147483647, %v392_v26 }
  0x7f   : > { %v504_v35 = vsel %vm503_vm14, %v2474_v50, %v500_v40  ;;  %v687_v60 = vadd.f32 %v686_v29, %v683_v13  ;;  %v694_v16 = vmul.f32 %v693_v58, %v2743_v18  ;;  %v454_v21 = vand.u32 2147483647, %v453_v51  ;;  %vm2889_vm14 = vmor %vm566_vm7, %vm567_vm11 }
  0x80   : > { %v508_v22 = vsel %vm2828_vm12, nan, %v504_v35  ;;  %v557_v31 = vsub.f32 1.5707964, %v555_v41  ;;  %v700_v3 = vstv %s2766_s30  ;;  %v703_v25 = vstv %s2785_s6  ;;  %vm2907_vm8 = vmand %vm572_vm9, %vm573_vm1  ;;  %s2951_s30 = sld [smem:[#allocation2 + $0x503]]  ;;  %s2955_s6 = sld [smem:[#allocation2 + $0x580]] }
  0x81   : > { %v514_v44 = vsel %vm513_vm13, %v2515_v2, %v508_v22  ;;  %v691_v24 = vadd.f32 %v690_v43, %v687_v60  ;;  %v701_v50 = vmul.f32 %v700_v3, %v2687_v56  ;;  %v704_v10 = vmul.f32 %v703_v25, %v2690_v57 }
  0x82   : > { %v515_v42 = vand.u32 2147483647, %v514_v44  ;;  %v558_v19 = vsel %vm556_vm15, %v557_v31, %v555_v41  ;;  %v707_v11 = vstv %s2801_s7  ;;  %v711_v20 = vstv %s2811_s8  ;;  %s2959_s7 = sld [smem:[#allocation2 + $0x581]]  ;;  %s2961_s8 = sld [smem:[#allocation2 + $0x582]] }
  0x83   : > { %v560_v0 = vsub.f32 3.1415927, %v558_v19  ;;  %v2871_v2 = vadd.f32 %v694_v16, %v691_v24  ;;  %v708_v34 = vmul.f32 %v707_v11, %v2716_v23  ;;  %v2881_v14 = vor.u32 %v394_v33, %v393_v6 }
  0x84   : > { %v577_v62 = vand.u32 2147483648, %v2440_v38  ;;  %v705_v39 = vadd.f32 %v704_v10, %v701_v50  ;;  %v712_v28 = vmul.f32 %v711_v20, %v2743_v18  ;;  %v2899_v1 = vor.u32 %v455_v45, %v454_v21 }
  0x85   : > { %v561_v33 = vsel %vm559_vm6, %v560_v0, %v558_v19  ;;  %v718_v49 = vstv %s2835_s9  ;;  %v721_v4 = vstv %s2837_s10  ;;  %v2928_v46 = vor.u32 %v516_v7, %v515_v42  ;;  %s2970_s9 = sld [smem:[#allocation4 + $0xa]]  ;;  %s2972_s10 = sld [smem:[#allocation2 + $0x583]] }
  0x86   : > { %v565_v9 = vsel %vm564_vm5, %v2713_v15, %v561_v33  ;;  %v709_v37 = vadd.f32 %v708_v34, %v705_v39  ;;  %v719_v45 = vmul.f32 %v718_v49, %v2687_v56  ;;  %v722_v47 = vmul.f32 %v721_v4, %v2690_v57 }
  0x87   : > { %v569_v5 = vsel %vm2889_vm14, nan, %v565_v9  ;;  %v725_v38 = vstv %s2852_s11  ;;  %v729_v15 = vstv %s2854_s12  ;;  %v736_v53 = vstv %s2862_s14  ;;  %s2976_s11 = sld [smem:[#allocation4 + $0xb]]  ;;  %s2982_s12 = sld [smem:[#allocation2 + $0x600]] }
  0x88   : > { %v575_v56 = vsel %vm2907_vm8, %v2762_v27, %v569_v5  ;;  %v2941_v57 = vadd.f32 %v712_v28, %v709_v37  ;;  %v723_v17 = vadd.f32 %v722_v47, %v719_v45  ;;  %v726_v7 = vmul.f32 %v725_v38, %v2716_v23  ;;  %s2984_s14 = sld [smem:[#allocation2 + $0x601]] }
  0x89   : > { %v576_v8 = vand.u32 2147483647, %v575_v56  ;;  %v730_v52 = vmul.f32 %v729_v15, %v2743_v18  ;;  %v739_v36 = vstv %s2864_s15  ;;  %v737_v12 = vmul.f32 %v736_v53, %v2881_v14  ;;  %s2991_s15 = sld [smem:[#allocation2 + $0x602]] }
  0x8a   : > { %v727_v27 = vadd.f32 %v726_v7, %v723_v17  ;;  %v740_v13 = vmul.f32 %v739_v36, %v2899_v1  ;;  %v743_v54 = vstv %s2875_s16  ;;  %v747_v26 = vstv %s2877_s17  ;;  %s2993_s16 = sld [smem:[#allocation2 + $0x603]]  ;;  %s2996_s17 = sld [smem:[#allocation2 + $0x680]] }
  0x8b   : > { %v578_v23 = vor.u32 %v577_v62, %v576_v8  ;;  %v744_v59 = vmul.f32 %v743_v54, %v2928_v46  ;;  %v754_v51 = vstv %s2895_s21  ;;  %v757_v48 = vstv %s2913_s23  ;;  %s2998_s21 = sld [smem:[#allocation2 + $0x681]]  ;;  %s3006_s23 = sld [smem:[#allocation4 + $0xc]] }
  0x8c   : > { %v2963_v18 = vadd.f32 %v730_v52, %v727_v27  ;;  %v741_v55 = vadd.f32 %v740_v13, %v737_v12  ;;  %v755_v29 = vmul.f32 %v754_v51, %v2881_v14  ;;  %v761_v58 = vstv %s2915_s18  ;;  %s3008_s18 = sld [smem:[#allocation2 + $0x682]] }
  0x8d   : > { %v748_v32 = vmul.f32 %v747_v26, %v578_v23  ;;  %v758_v41 = vmul.f32 %v757_v48, %v2899_v1  ;;  %v762_v43 = vmul.f32 %v761_v58, %v2928_v46  ;;  %v751_v6 = vstv %s2922_s24  ;;  %s3012_s24 = sld [smem:[#allocation2 + $0x683]] }
  0x8e   : > { %v745_v40 = vadd.f32 %v744_v59, %v741_v55  ;;  %v765_v35 = vstv %s2924_s25  ;;  %v772_v60 = vstv %s2934_s26  ;;  %v775_v16 = vstv %s2936_s27  ;;  %s3014_s25 = sld [smem:[#allocation2 + $0x700]]  ;;  %s3019_s26 = sld [smem:[#allocation2 + $0x701]] }
  0x8f   : > { %v759_v22 = vadd.f32 %v758_v41, %v755_v29  ;;  %v766_v31 = vmul.f32 %v765_v35, %v578_v23  ;;  %v773_v3 = vmul.f32 %v772_v60, %v2881_v14  ;;  %v769_v44 = vstv %s2944_s28  ;;  %s3021_s27 = sld [smem:[#allocation2 + $0x702]]  ;;  %s3025_s28 = sld [smem:[#allocation2 + $0x703]] }
  0x90   : > { %v749_v21 = vadd.f32 %v748_v32, %v745_v40  ;;  %v776_v24 = vmul.f32 %v775_v16, %v2899_v1  ;;  %v779_v50 = vstv %s2949_s29  ;;  %v783_v25 = vstv %s2951_s30  ;;  %s3029_s29 = sld [smem:[#allocation4 + $0xd]]  ;;  %s3031_s30 = sld [smem:[#allocation2 + $0x780]] }
  0x91   : > { %v763_v19 = vadd.f32 %v762_v43, %v759_v22  ;;  %v780_v10 = vmul.f32 %v779_v50, %v2928_v46  ;;  %v784_v11 = vmul.f32 %v783_v25, %v578_v23  ;;  %v790_v34 = vstv %s2955_s6  ;;  %s3033_s6 = sld [smem:[#allocation2 + $0x781]] }
  0x92   : > { %v752_v42 = vadd.f32 %v751_v6, %v749_v21  ;;  %v777_v0 = vadd.f32 %v776_v24, %v773_v3  ;;  %v793_v20 = vstv %s2959_s7  ;;  %v797_v30 = vstv %s2961_s8  ;;  %s3037_s7 = sld [smem:[#allocation2 + $0x782]]  ;;  %s3039_s8 = sld [smem:[#allocation2 + $0x783]] }
  0x93   : > { %v767_v62 = vadd.f32 %v766_v31, %v763_v19  ;;  %v791_v39 = vmul.f32 %v790_v34, %v2881_v14  ;;  %v794_v28 = vmul.f32 %v793_v20, %v2899_v1  ;;  %v798_v33 = vmul.f32 %v797_v30, %v2928_v46 }
  0x94   : > { %v781_v63 = vadd.f32 %v780_v10, %v777_v0  ;;  %v787_v49 = vstv %s2970_s9  ;;  %v801_v4 = vstv %s2972_s10  ;;  %vm807_vm6 = vcmp.ge.f32.partialorder %v752_v42, 0.0  ;;  %s3043_s9 = sld [smem:[#allocation4 + $0xe]]  ;;  %s3058_s10 = sld [smem:[#allocation4 + $0xf]] }
  0x95   : > { %v770_v14 = vadd.f32 %v769_v44, %v767_v62  ;;  %v795_v9 = vadd.f32 %v794_v28, %v791_v39  ;;  %v802_v1 = vmul.f32 %v801_v4, %v578_v23  ;;  %v808_v37 = vmul.f32 0.1, %v752_v42 }
  0x96   : > { %v785_v45 = vadd.f32 %v784_v11, %v781_v63  ;;  %v805_v47 = vstv %s2976_s11  ;;  %v820_v46 = vstv %s2982_s12  ;;  %v823_v5 = vstv %s2984_s14  ;;  %s3131_s11 = sld [smem:[#allocation4 + $0x4]]  ;;  %s3152_s12 = sld [smem:[#allocation4 + $0x5]] }
  0x97   : > { %v799_v38 = vadd.f32 %v798_v33, %v795_v9  ;;  %v809_v15 = vsel %vm807_vm6, %v752_v42, %v808_v37  ;;  %vm810_vm10 = vcmp.ge.f32.partialorder %v770_v14, 0.0  ;;  %v811_v56 = vmul.f32 0.1, %v770_v14 }
  0x98   : > { %v788_v17 = vadd.f32 %v787_v49, %v785_v45  ;;  %v821_v7 = vmul.f32 %v820_v46, %v809_v15  ;;  %v827_v8 = vstv %s2991_s15  ;;  %v831_v52 = vstv %s2993_s16  ;;  %s3347_s16 = scalar_lea.vmem %s3433_s4, %s2331_s13 }
  0x99   : > { %v803_v53 = vadd.f32 %v802_v1, %v799_v38  ;;  %v812_v36 = vsel %vm810_vm10, %v770_v14, %v811_v56  ;;  %v838_v27 = vstv %s2996_s17  ;;  %v841_v12 = vstv %s2998_s21 }
  0x9a   : > { %vm813_vm15 = vcmp.ge.f32.partialorder %v788_v17, 0.0  ;;  %v814_v13 = vmul.f32 0.1, %v788_v17  ;;  %v824_v23 = vmul.f32 %v823_v5, %v812_v36  ;;  %v839_v54 = vmul.f32 %v838_v27, %v809_v15 }
  0x9b   : > { %v806_v26 = vadd.f32 %v805_v47, %v803_v53  ;;  %v835_v55 = vstv %s3006_s23  ;;  %v842_v59 = vmul.f32 %v841_v12, %v812_v36  ;;  %v845_v51 = vstv %s3008_s18  ;;  %s3353_s23 = scalar_lea.vmem %s3434_s5, %s2331_s13  ;;  %s1967_s13 = sld [smem:[#allocation4 + $0x6]] }
  0x9c   : > { %v815_v32 = vsel %vm813_vm15, %v788_v17, %v814_v13  ;;  %v825_v29 = vadd.f32 %v824_v23, %v821_v7  ;;  %v849_v48 = vstv %s3012_s24  ;;  %v856_v58 = vstv %s3014_s25  ;;  %s1972_s18 = sld [smem:[#allocation4 + $0x7]] }
  0x9d   : > { %vm816_vm7 = vcmp.ge.f32.partialorder %v806_v26, 0.0  ;;  %v817_v40 = vmul.f32 0.1, %v806_v26  ;;  %v828_v41 = vmul.f32 %v827_v8, %v815_v32  ;;  %v843_v43 = vadd.f32 %v842_v59, %v839_v54 }
  0x9e   : > { %v846_v6 = vmul.f32 %v845_v51, %v815_v32  ;;  %v857_v35 = vmul.f32 %v856_v58, %v809_v15  ;;  %v859_v60 = vstv %s3019_s26  ;;  %v863_v16 = vstv %s3021_s27 }
  0x9f   : > { %v818_v21 = vsel %vm816_vm7, %v806_v26, %v817_v40  ;;  %v829_v22 = vadd.f32 %v828_v41, %v825_v29  ;;  %v860_v31 = vmul.f32 %v859_v60, %v812_v36  ;;  %v864_v3 = vmul.f32 %v863_v16, %v815_v32 }
  0xa0   : > { %v832_v44 = vmul.f32 %v831_v52, %v818_v21  ;;  %v847_v24 = vadd.f32 %v846_v6, %v843_v43  ;;  %v850_v50 = vmul.f32 %v849_v48, %v818_v21  ;;  %v867_v25 = vstv %s3025_s28 }
  0xa1   : > { %v853_v42 = vstv %s3029_s29  ;;  %v861_v19 = vadd.f32 %v860_v31, %v857_v35  ;;  %v868_v10 = vmul.f32 %v867_v25, %v818_v21  ;;  %v874_v11 = vstv %s3031_s30 }
  0xa2   : > { %v833_v0 = vadd.f32 %v832_v44, %v829_v22  ;;  %v851_v34 = vadd.f32 %v850_v50, %v847_v24  ;;  %v875_v20 = vmul.f32 %v874_v11, %v809_v15  ;;  %v877_v30 = vstv %s3033_s6 }
  0xa3   : > { %v865_v62 = vadd.f32 %v864_v3, %v861_v19  ;;  %v878_v39 = vmul.f32 %v877_v30, %v812_v36  ;;  %v881_v28 = vstv %s3037_s7  ;;  %v885_v33 = vstv %s3039_s8 }
  0xa4   : > { %v3053_v63 = vadd.f32 %v835_v55, %v833_v0  ;;  %v871_v49 = vstv %s3043_s9  ;;  %v882_v4 = vmul.f32 %v881_v28, %v815_v32  ;;  %v3056_v14 = vadd.f32 %v853_v42, %v851_v34 }
  0xa5   : > { %v869_v9 = vadd.f32 %v868_v10, %v865_v62  ;;  %v879_v1 = vadd.f32 %v878_v39, %v875_v20  ;;  %v886_v37 = vmul.f32 %v885_v33, %v818_v21  ;;  %v889_v54 = vstv %s3058_s10 }
  0xa6   : > { %v891_v45 = vand.u32 2147483647, %v3053_v63  ;;  %v894_v47 = vand.u32 2139095040, %v3053_v63  ;;  %v1102_v17 = vand.u32 2147483647, %v3056_v14  ;;  %v1105_v7 = vand.u32 2139095040, %v3056_v14 }
  0xa7   : > { %v883_v46 = vadd.f32 %v882_v4, %v879_v1  ;;  %v3062_v5 = vadd.f32 %v871_v49, %v869_v9  ;;  %v2228_v41 = vmov 683565275   ;;  %v2229_v6 = vmov 2475754826  }
  0xa8   : > { %v895_v38 = vshrl.u32 %v894_v47, 23  ;;  %v898_v56 = vand.u32 8388607, %v891_v45  ;;  %v1106_v52 = vshrl.u32 %v1105_v7, 23  ;;  %v1109_v53 = vand.u32 8388607, %v1102_v17 }
  0xa9   : > { %v3064_v15 = vadd.f32 %v886_v37, %v883_v46  ;;  %v1318_v23 = vand.u32 2139095040, %v3062_v5  ;;  %v1315_v32 = vand.u32 2147483647, %v3062_v5  ;;  %v2230_v60 = vmov 2131351028  }
  0xaa   : > { %v2013_v8 = vadd.s32 4294967169, %v895_v38  ;;  %v899_v27 = vor.u32 8388608, %v898_v56  ;;  %v2021_v12 = vadd.s32 4294967169, %v1106_v52  ;;  %v1110_v13 = vor.u32 8388608, %v1109_v53 }
  0xab   : > { %v3079_v58 = vshrl.u32 %v1318_v23, 23  ;;  %v2231_v21 = vmov 2102212464   ;;  %v2232_v31 = vmov 920167782   ;;  %vm893_vm10 = vcmp.lt.s32.totalorder %v3053_v63, 0 }
  0xac   : > { %v901_v36 = vadd.s32 1, %v2013_v8  ;;  %v1112_v55 = vadd.s32 1, %v2021_v12  ;;  %v3075_v29 = vshll.u32 %v899_v27, 8  ;;  %v3077_v48 = vshll.u32 %v1110_v13, 8 }
  0xad   : > { %v2233_v19 = vmov 1326507024   ;;  %vm3176_vm15 = vcmp.le.f32.partialorder %v891_v45, 0.7853982 }
  0xae   : > { %vm902_vm11 = vcmp.gt.s32.totalorder %v901_v36, 0  ;;  %vm1113_vm0 = vcmp.gt.s32.totalorder %v1112_v55, 0 }
  0xaf   : > { %v903_v26 = vsel %vm902_vm11, %v901_v36, 0  ;;  %v1114_v20 = vsel %vm1113_vm0, %v1112_v55, 0 }
  0xb0   : > { %v904_v59 = vshrl.u32 %v903_v26, 5  ;;  %v905_v51 = vand.u32 31, %v903_v26  ;;  %v1115_v39 = vshrl.u32 %v1114_v20, 5  ;;  %v1116_v28 = vand.u32 31, %v1114_v20 }
  0xb2   : > { %v906_v40 = vsub.s32 32, %v905_v51  ;;  %v908_v43 = vshll.u32 %v2228_v41, %v905_v51  ;;  %v911_v35 = vshll.u32 %v2229_v6, %v905_v51  ;;  %v914_v16 = vshll.u32 %v2230_v60, %v905_v51 }
  0xb3   : > { %v917_v22 = vshll.u32 %v2231_v21, %v905_v51  ;;  %v920_v3 = vshll.u32 %v2232_v31, %v905_v51  ;;  %vm923_vm9 = vcmp.lt.s32.totalorder %v904_v59, 1  ;;  %vm924_vm4 = vcmp.lt.s32.totalorder %v904_v59, 2 }
  0xb4   : > { %v907_v44 = vshrl.u32 %v2228_v41, %v906_v40  ;;  %v909_v24 = vshrl.u32 %v2229_v6, %v906_v40  ;;  %v912_v50 = vshrl.u32 %v2230_v60, %v906_v40  ;;  %v915_v25 = vshrl.u32 %v2231_v21, %v906_v40 }
  0xb5   : > { %v918_v42 = vshrl.u32 %v2232_v31, %v906_v40  ;;  %v921_v10 = vshrl.u32 %v2233_v19, %v906_v40  ;;  %vm925_vm5 = vcmp.lt.s32.totalorder %v904_v59, 3  ;;  %vm926_vm2 = vcmp.lt.s32.totalorder %v904_v59, 4 }
  0xb6   : > { %v910_v11 = vor.u32 %v909_v24, %v908_v43  ;;  %v913_v0 = vor.u32 %v912_v50, %v911_v35  ;;  %v916_v34 = vor.u32 %v915_v25, %v914_v16  ;;  %v1117_v46 = vsub.s32 32, %v1116_v28 }
  0xb7   : > { %v919_v30 = vor.u32 %v918_v42, %v917_v22  ;;  %v922_v62 = vor.u32 %v921_v10, %v920_v3  ;;  %v1119_v8 = vshll.u32 %v2228_v41, %v1116_v28  ;;  %v1122_v51 = vshll.u32 %v2229_v6, %v1116_v28 }
  0xb8   : > { %v927_v33 = vsel %vm923_vm9, %v907_v44, %v910_v11  ;;  %v928_v49 = vsel %vm926_vm2, %v916_v34, 2102212464  ;;  %v931_v4 = vsel %vm923_vm9, %v910_v11, %v913_v0  ;;  %v935_v9 = vsel %vm923_vm9, %v913_v0, %v916_v34 }
  0xb9   : > { %v929_v1 = vsel %vm925_vm5, %v913_v0, %v928_v49  ;;  %v932_v37 = vsel %vm926_vm2, %v919_v30, 920167782  ;;  %v936_v47 = vsel %vm926_vm2, %v922_v62, 1326507024  ;;  %v1118_v27 = vshrl.u32 %v2228_v41, %v1117_v46 }
  0xba   : > { %v930_v38 = vsel %vm924_vm4, %v927_v33, %v929_v1  ;;  %v933_v56 = vsel %vm925_vm5, %v916_v34, %v932_v37  ;;  %v937_v7 = vsel %vm925_vm5, %v919_v30, %v936_v47  ;;  %v1120_v55 = vshrl.u32 %v2229_v6, %v1117_v46 }
  0xbb   : > { %v934_v52 = vsel %vm924_vm4, %v931_v4, %v933_v56  ;;  %v938_v53 = vsel %vm924_vm4, %v935_v9, %v937_v7  ;;  %v946_v36 = vmul.u32 %v3075_v29, %v930_v38  ;;  %v1123_v59 = vshrl.u32 %v2230_v60, %v1117_v46 }
  0xbc   : > { %v3106_v12 = vmul.u32.u64.low %v3075_v29, %v938_v53  ;;  %v3107_v13 = vmul.u32.u64.high %v3075_v29, %v938_v53, %v3106_v12  ;;  %v3110_v23 = vmul.u32.u64.low %v3075_v29, %v934_v52  ;;  %v3111_v26 = vmul.u32.u64.high %v3075_v29, %v934_v52, %v3110_v23 }
  0xbd   : > { %v1125_v40 = vshll.u32 %v2230_v60, %v1116_v28  ;;  %v1126_v43 = vshrl.u32 %v2231_v21, %v1117_v46  ;;  %v1128_v35 = vshll.u32 %v2231_v21, %v1116_v28  ;;  %v1129_v16 = vshrl.u32 %v2232_v31, %v1117_v46 }
  0xbe   : > { %v1131_v22 = vshll.u32 %v2232_v31, %v1116_v28  ;;  %v1121_v3 = vor.u32 %v1120_v55, %v1119_v8  ;;  %v1124_v29 = vor.u32 %v1123_v59, %v1122_v51  ;;  %v1132_v44 = vshrl.u32 %v2233_v19, %v1117_v46 }
  0xbf   : > { %vm1134_vm12 = vcmp.lt.s32.totalorder %v1115_v39, 1  ;;  %vm948_vm3 = vc.u32 %v3107_v13, %v3110_v23  ;;  %v949_v24 = vadd.s32 1, %v3111_v26  ;;  %v1127_v50 = vor.u32 %v1126_v43, %v1125_v40 }
  0xc0   : > { %v2031_v25 = vadd.s32 4294967169, %v3079_v58  ;;  %v1130_v42 = vor.u32 %v1129_v16, %v1128_v35  ;;  %v1133_v10 = vor.u32 %v1132_v44, %v1131_v22  ;;  %vm1135_vm13 = vcmp.lt.s32.totalorder %v1115_v39, 2 }
  0xc1   : > { %vm1136_vm1 = vcmp.lt.s32.totalorder %v1115_v39, 3  ;;  %v950_v11 = vsel %vm948_vm3, %v949_v24, %v3111_v26  ;;  %vm1137_vm14 = vcmp.lt.s32.totalorder %v1115_v39, 4  ;;  %v1138_v0 = vsel %vm1134_vm12, %v1118_v27, %v1121_v3 }
  0xc2   : > { %v1142_v34 = vsel %vm1134_vm12, %v1121_v3, %v1124_v29  ;;  %v951_v20 = vadd.s32 %v950_v11, %v946_v36  ;;  %v1139_v30 = vsel %vm1137_vm14, %v1127_v50, 2102212464  ;;  %v1143_v62 = vsel %vm1137_vm14, %v1130_v42, 920167782 }
  0xc3   : > { %v1146_v28 = vsel %vm1134_vm12, %v1124_v29, %v1127_v50  ;;  %v1140_v58 = vsel %vm1136_vm1, %v1124_v29, %v1139_v30  ;;  %v1144_v33 = vsel %vm1136_vm1, %v1127_v50, %v1143_v62  ;;  %v1147_v49 = vsel %vm1137_vm14, %v1133_v10, 1326507024 }
  0xc4   : > { %v1325_v4 = vadd.s32 1, %v2031_v25  ;;  %v3138_v9 = vadd.f32 %v889_v54, %v3064_v15  ;;  %v952_v1 = vadd.s32 536870912, %v951_v20  ;;  %v1145_v37 = vsel %vm1135_vm13, %v1142_v34, %v1144_v33 }
  0xc5   : > { %v1148_v47 = vsel %vm1136_vm1, %v1130_v42, %v1147_v49  ;;  %v1141_v46 = vsel %vm1135_vm13, %v1138_v0, %v1140_v58  ;;  %v3145_v56 = vmul.u32.u64.low %v3077_v48, %v1145_v37  ;;  %v3146_v7 = vmul.u32.u64.high %v3077_v48, %v1145_v37, %v3145_v56 }
  0xc6   : > { %v1149_v38 = vsel %vm1135_vm13, %v1146_v28, %v1148_v47  ;;  %v953_v8 = vshrl.u32 %v952_v1, 30  ;;  %vm1326_vm8 = vcmp.gt.s32.totalorder %v1325_v4, 0  ;;  %v1157_v36 = vmul.u32 %v3077_v48, %v1141_v46 }
  0xc7   : > { %v3149_v52 = vmul.u32.u64.low %v3077_v48, %v1149_v38  ;;  %v3150_v53 = vmul.u32.u64.high %v3077_v48, %v1149_v38, %v3149_v52  ;;  %v1327_v15 = vsel %vm1326_vm8, %v1325_v4, 0  ;;  %v1322_v39 = vand.u32 8388607, %v1315_v32 }
  0xc8   : > { %v954_v54 = vshll.u32 %v953_v8, 30  ;;  %v1528_v27 = vand.u32 2147483647, %v3138_v9  ;;  %v1160_v12 = vadd.s32 1, %v3146_v7  ;;  %v1531_v26 = vand.u32 2139095040, %v3138_v9 }
  0xc9   : > { %v977_v51 = vsub.s32 4, %v953_v8  ;;  %vm1159_vm6 = vc.u32 %v3150_v53, %v3145_v56  ;;  %v1329_v59 = vand.u32 31, %v1327_v15  ;;  %v679_v40 = vstv %s3131_s11 }
  0xca   : > { %v955_v55 = vsub.s32 %v951_v20, %v954_v54  ;;  %v1161_v43 = vsel %vm1159_vm6, %v1160_v12, %v3146_v7  ;;  %v1323_v16 = vor.u32 8388608, %v1322_v39  ;;  %v3165_v22 = vand.u32 8388607, %v1528_v27 }
  0xcb   : > { %v1162_v48 = vadd.s32 %v1161_v43, %v1157_v36  ;;  %v1532_v3 = vshrl.u32 %v1531_v26, 23  ;;  %v978_v44 = vsel %vm893_vm10, %v977_v51, %v953_v8  ;;  %v1330_v24 = vsub.s32 32, %v1329_v59 }
  0xcc   : > { %v957_v35 = vsub.s32 0, %v955_v55  ;;  %v3171_v50 = vadd.f32 %v679_v40, %v2817_v61  ;;  %v697_v25 = vstv %s3152_s12  ;;  %v947_v11 = vadd.s32 %v3110_v23, %v3107_v13 }
  0xcd   : > { %v1163_v10 = vadd.s32 536870912, %v1162_v48  ;;  %v3182_v34 = vshll.u32 %v1323_v16, 8  ;;  %v1536_v20 = vor.u32 8388608, %v3165_v22  ;;  %v980_v61 = vsel %vm3176_vm15, 0, %v978_v44 }
  0xce   : > { %v2014_v29 = vmin.u32 %v957_v35, %v955_v55  ;;  %v3189_v62 = vshrl.u32 %v1327_v15, 5  ;;  %v2041_v45 = vadd.s32 4294967169, %v1532_v3  ;;  %v1332_v58 = vshll.u32 %v2228_v41, %v1329_v59 }
  0xcf   : > { %v3187_v30 = vshrl.u32 %v1163_v10, 30  ;;  %v1333_v33 = vshrl.u32 %v2229_v6, %v1330_v24  ;;  %v1335_v13 = vshll.u32 %v2229_v6, %v1329_v59  ;;  %v1336_v49 = vshrl.u32 %v2230_v60, %v1330_v24 }
  0xd0   : > { %v959_v0 = vclz %v2014_v29  ;;  %v1341_v4 = vshll.u32 %v2231_v21, %v1329_v59  ;;  %v1342_v1 = vshrl.u32 %v2232_v31, %v1330_v24  ;;  %v3198_v37 = vand.u32 3, %v980_v61 }
  0xd1   : > { %v1165_v23 = vshll.u32 %v3187_v30, 30  ;;  %v1158_v47 = vadd.s32 %v3145_v56, %v3150_v53  ;;  %v1338_v46 = vshll.u32 %v2230_v60, %v1329_v59  ;;  %v1339_v8 = vshrl.u32 %v2231_v21, %v1330_v24 }
  0xd2   : > { %v2015_v28 = vadd.s32 4294967294, %v959_v0  ;;  %v1344_v52 = vshll.u32 %v2232_v31, %v1329_v59  ;;  %v1345_v39 = vshrl.u32 %v2233_v19, %v1330_v24  ;;  %v1334_v26 = vor.u32 %v1333_v33, %v1332_v58 }
  0xd3   : > { %v3202_v7 = vsub.s32 %v1162_v48, %v1165_v23  ;;  %v1337_v51 = vor.u32 %v1336_v49, %v1335_v13  ;;  %v1343_v40 = vor.u32 %v1342_v1, %v1341_v4  ;;  %vm1347_vm11 = vcmp.lt.s32.totalorder %v3189_v62, 1 }
  0xd4   : > { %vm2016_vm7 = vcmp.lt.s32.totalorder %v2015_v28, 0  ;;  %vm1350_vm0 = vcmp.lt.s32.totalorder %v3189_v62, 4  ;;  %v1331_v59 = vshrl.u32 %v2228_v41, %v1330_v24  ;;  %v1340_v35 = vor.u32 %v1339_v8, %v1338_v46 }
  0xd5   : > { %v962_v38 = vsel %vm2016_vm7, 0, %v2015_v28  ;;  %v1168_v12 = vsub.s32 0, %v3202_v7  ;;  %vm1348_vm9 = vcmp.lt.s32.totalorder %v3189_v62, 2  ;;  %v1346_v16 = vor.u32 %v1345_v39, %v1344_v52 }
  0xd6   : > { %v963_v15 = vsub.s32 32, %v962_v38  ;;  %v964_v54 = vshll.u32 %v955_v55, %v962_v38  ;;  %v967_v36 = vsub.s32 4294967266, %v962_v38  ;;  %vm1349_vm4 = vcmp.lt.s32.totalorder %v3189_v62, 3 }
  0xd7   : > { %v2022_v43 = vmin.u32 %v1168_v12, %v3202_v7  ;;  %v1352_v29 = vsel %vm1350_vm0, %v1340_v35, 2102212464  ;;  %v1355_v44 = vsel %vm1347_vm11, %v1334_v26, %v1337_v51  ;;  %v1356_v10 = vsel %vm1350_vm0, %v1343_v40, 920167782 }
  0xd8   : > { %v965_v56 = vshrl.u32 %v947_v11, %v963_v15  ;;  %v968_v53 = vadd.s32 127, %v967_v36  ;;  %v1089_v0 = vadd.s32 3, %v980_v61  ;;  %vm1104_vm5 = vcmp.lt.s32.totalorder %v3056_v14, 0 }
  0xd9   : > { %v1170_v3 = vclz %v2022_v43  ;;  %v1188_v28 = vsub.s32 4, %v3187_v30  ;;  %v1351_v33 = vsel %vm1347_vm11, %v1331_v59, %v1334_v26  ;;  %v1357_v13 = vsel %vm1349_vm4, %v1340_v35, %v1356_v10 }
  0xda   : > { %v966_v55 = vor.u32 %v965_v56, %v964_v54  ;;  %v969_v48 = vshll.u32 %v968_v53, 23  ;;  %v1359_v23 = vsel %vm1347_vm11, %v1337_v51, %v1340_v35  ;;  %v1353_v4 = vsel %vm1349_vm4, %v1337_v51, %v1352_v29 }
  0xdb   : > { %v2023_v58 = vadd.s32 4294967294, %v1170_v3  ;;  %v1358_v61 = vsel %vm1348_vm9, %v1355_v44, %v1357_v13  ;;  %v1360_v1 = vsel %vm1350_vm0, %v1346_v16, 1326507024  ;;  %v1538_v36 = vadd.s32 1, %v2041_v45 }
  0xdc   : > { %v970_v11 = vor.u32 4788187, %v969_v48  ;;  %v973_v24 = vcvt.s32.f32 %v966_v55  ;;  %v1361_v46 = vsel %vm1349_vm4, %v1343_v40, %v1360_v1  ;;  %v1354_v51 = vsel %vm1348_vm9, %v1351_v33, %v1353_v4 }
  0xdd   : > { %vm2024_vm2 = vcmp.lt.s32.totalorder %v2023_v58, 0  ;;  %v3237_v38 = vmul.u32.u64.low %v3182_v34, %v1358_v61  ;;  %v3238_v8 = vmul.u32.u64.high %v3182_v34, %v1358_v61, %v3237_v38  ;;  %v1362_v54 = vsel %vm1348_vm9, %v1359_v23, %v1361_v46 }
  0xde   : > { %v971_v49 = vand.u32 2147483647, %v970_v11  ;;  %v1173_v15 = vsel %vm2024_vm2, 0, %v2023_v58  ;;  %v3247_v40 = vmul.u32.u64.low %v3182_v34, %v1362_v54  ;;  %v3248_v53 = vmul.u32.u64.high %v3182_v34, %v1362_v54, %v3247_v40 }
  0xdf   : > { %v1174_v39 = vsub.s32 32, %v1173_v15  ;;  %v1175_v12 = vshll.u32 %v3202_v7, %v1173_v15  ;;  %v1178_v26 = vsub.s32 4294967266, %v1173_v15  ;;  %vm1539_vm12 = vcmp.gt.s32.totalorder %v1538_v36, 0 }
  0xe0   : > { %v974_v52 = vmul.f32 %v973_v24, %v971_v49  ;;  %v1373_v35 = vadd.s32 1, %v3238_v8  ;;  %v1540_v55 = vsel %vm1539_vm12, %v1538_v36, 0  ;;  %v3253_v48 = vand.u32 3, %v1089_v0 }
  0xe1   : > { %v1176_v43 = vshrl.u32 %v1158_v47, %v1174_v39  ;;  %v1179_v59 = vadd.s32 127, %v1178_v26  ;;  %vm3257_vm3 = vcmp.le.f32.partialorder %v1102_v17, 0.7853982  ;;  %v1370_v7 = vmul.u32 %v3182_v34, %v1354_v51 }
  0xe2   : > { %v975_v56 = vxor.u32 2147483648, %v974_v52  ;;  %v1542_v16 = vand.u32 31, %v1540_v55  ;;  %v1189_v44 = vsel %vm1104_vm5, %v1188_v28, %v3187_v30  ;;  %vm1372_vm13 = vc.u32 %v3248_v53, %v3237_v38 }
  0xe3   : > { %v1177_v3 = vor.u32 %v1176_v43, %v1175_v12  ;;  %v1180_v29 = vshll.u32 %v1179_v59, 23  ;;  %v3270_v17 = vshrl.u32 %v1540_v55, 5  ;;  %v1374_v24 = vsel %vm1372_vm13, %v1373_v35, %v3238_v8 }
  0xe4   : > { %v976_v45 = vsel %vm893_vm10, %v975_v56, %v974_v52  ;;  %v1543_v10 = vsub.s32 32, %v1542_v16  ;;  %vm989_vm1 = vcmp.eq.s32.totalorder %v3198_v37, 2  ;;  %v1375_v42 = vadd.s32 %v1374_v24, %v1370_v7 }
  0xe5   : > { %v979_v47 = vsel %vm3176_vm15, %v3053_v63, %v976_v45  ;;  %v1181_v34 = vor.u32 4788187, %v1180_v29  ;;  %v1184_v11 = vcvt.s32.f32 %v1177_v3  ;;  %v1545_v58 = vshll.u32 %v2228_v41, %v1542_v16 }
  0xe6   : > { %2144 = vcosq.f32 %v979_v47  ;;  %v1544_v0 = vshrl.u32 %v2228_v41, %v1543_v10  ;;  %v1546_v30 = vshrl.u32 %v2229_v6, %v1543_v10  ;;  %vm986_vm14 = vcmp.eq.s32.totalorder %v3198_v37, 0 }
  0xe7   : > { %2146 = vsinq.f32 %v979_v47  ;;  %v1182_v28 = vand.u32 2147483647, %v1181_v34  ;;  %v1548_v33 = vshll.u32 %v2229_v6, %v1542_v16  ;;  %v1549_v13 = vshrl.u32 %v2230_v60, %v1543_v10 }
  0xe8   : > { %v1551_v23 = vshll.u32 %v2230_v60, %v1542_v16  ;;  %vm985_vm8 = vcmp.lt.s32.totalorder %v3198_v37, 2  ;;  %vm1091_vm6 = vcmp.lt.s32.totalorder %v3253_v48, 2  ;;  %v1376_v49 = vadd.s32 536870912, %v1375_v42 }
  0xe9   : > { %v1547_v4 = vor.u32 %v1546_v30, %v1545_v58  ;;  %v1552_v61 = vshrl.u32 %v2231_v21, %v1543_v10  ;;  %v1554_v41 = vshll.u32 %v2231_v21, %v1542_v16  ;;  %v1185_v1 = vmul.f32 %v1184_v11, %v1182_v28 }
  0xea   : > { %v1550_v46 = vor.u32 %v1549_v13, %v1548_v33  ;;  %v1555_v8 = vshrl.u32 %v2232_v31, %v1543_v10  ;;  %v3287_v6 = vshll.u32 %v2232_v31, %v1542_v16  ;;  %v3289_v52 = vshrl.u32 %v1376_v49, 30 }
  0xeb   : > { %v1553_v60 = vor.u32 %v1552_v61, %v1551_v23  ;;  %v1558_v15 = vshrl.u32 %v2233_v19, %v1543_v10  ;;  %vm1560_vm10 = vcmp.lt.s32.totalorder %v3270_v17, 1  ;;  %vm1095_vm15 = vcmp.eq.s32.totalorder %v3253_v48, 2 }
  0xec   : > { %v1186_v54 = vxor.u32 2147483648, %v1185_v1  ;;  %v1191_v21 = vsel %vm3257_vm3, 0, %v1189_v44  ;;  %v1556_v36 = vor.u32 %v1555_v8, %v1554_v41  ;;  %v1378_v39 = vshll.u32 %v3289_v52, 30 }
  0xed   : > { %v1559_v12 = vor.u32 %v1558_v15, %v3287_v6  ;;  %vm1562_vm7 = vcmp.lt.s32.totalorder %v3270_v17, 3  ;;  %vm1563_vm11 = vcmp.lt.s32.totalorder %v3270_v17, 4  ;;  %v1564_v19 = vsel %vm1560_vm10, %v1544_v0, %v1547_v4 }
  0xee   : > { %v1187_v31 = vsel %vm1104_vm5, %v1186_v54, %v1185_v1  ;;  %v1565_v26 = vsel %vm1563_vm11, %v1553_v60, 2102212464  ;;  %v1568_v51 = vsel %vm1560_vm10, %v1547_v4, %v1550_v46  ;;  %v3311_v43 = vsub.s32 %v1375_v42, %v1378_v39 }
  0xef   : > { %v1190_v40 = vsel %vm3257_vm3, %v3056_v14, %v1187_v31  ;;  %vm1561_vm0 = vcmp.lt.s32.totalorder %v3270_v17, 2  ;;  %v1566_v59 = vsel %vm1562_vm7, %v1550_v46, %v1565_v26  ;;  %vm1092_vm9 = vcmp.eq.s32.totalorder %v3253_v48, 0 }
  0xf0   : > { %v2145_v56 = vpop.eup %2144  ;;  %2148 = vcosq.f32 %v1190_v40  ;;  %v3319_v45 = vsel %vm1561_vm0, %v1564_v19, %v1566_v59  ;;  %v1301_v62 = vadd.s32 3, %v1191_v21  ;;  %v1381_v16 = vsub.s32 0, %v3311_v43 }
  0xf1   : > { %v2147_v35 = vpop.eup %2146  ;;  %v990_v55 = vxor.u32 2147483648, %v2145_v56  ;;  %2150 = vsinq.f32 %v1190_v40  ;;  %vm983_vm4 = vweird.f32 %v3053_v63  ;;  %v1195_v29 = vand.u32 3, %v1191_v21 }
  0xf2   : > { %v987_v7 = vxor.u32 2147483648, %v2147_v35  ;;  %v2032_v34 = vmin.u32 %v1381_v16, %v3311_v43  ;;  %v1569_v11 = vsel %vm1563_vm11, %v1556_v36, 920167782  ;;  %v698_v24 = vadd.f32 %v697_v25, %v2871_v2 }
  0xf3   : > { %v991_v47 = vsel %vm989_vm1, %v990_v55, %v2147_v35  ;;  %v1097_v3 = vsel %vm1095_vm15, %v990_v55, %v2147_v35  ;;  %v3341_v0 = vshll.u32 %v1536_v20, 8  ;;  %v1302_v37 = vand.u32 3, %v1301_v62 }
  0xf4   : > { %v988_v44 = vsel %vm986_vm14, %v2145_v56, %v987_v7  ;;  %v1094_v10 = vsel %vm1092_vm9, %v2145_v56, %v987_v7  ;;  %v1383_v48 = vclz %v2032_v34  ;;  %v1570_v58 = vsel %vm1562_vm7, %v1553_v60, %v1569_v11 }
  0xf5   : > { %v992_v63 = vsel %vm985_vm8, %v988_v44, %v991_v47  ;;  %v1098_v42 = vsel %vm1091_vm6, %v1094_v10, %v1097_v3  ;;  %v1572_v30 = vsel %vm1560_vm10, %v1550_v46, %v1553_v60  ;;  %vm1194_vm5 = vweird.f32 %v3056_v14 }
  0xf6   : > { %v993_v2 = vsel %vm983_vm4, nan, %v992_v63  ;;  %v1099_v25 = vsel %vm983_vm4, nan, %v1098_v42  ;;  %vm1196_vm2 = vcmp.lt.s32.totalorder %v1195_v29, 2  ;;  %vm1197_vm12 = vcmp.eq.s32.totalorder %v1195_v29, 0 }
  0xf7   : > { %v994_v22 = vmul.f32 %v993_v2, %v3171_v50  ;;  %v1100_v20 = vmul.f32 %v1099_v25, %v3171_v50  ;;  %v2033_v28 = vadd.s32 4294967294, %v1383_v48  ;;  %vm1200_vm3 = vcmp.eq.s32.totalorder %v1195_v29, 2 }
  0xf8   : > { %v1371_v33 = vadd.s32 %v3237_v38, %v3248_v53  ;;  %v1571_v50 = vsel %vm1561_vm0, %v1568_v51, %v1570_v58  ;;  %v1573_v13 = vsel %vm1563_vm11, %v1559_v12, 1326507024  ;;  %vm1304_vm1 = vcmp.eq.s32.totalorder %v1302_v37, 0 }
  0xf9   : > { %995 = vst [vmem:[%s3347_s16] sm:$0xff] %v994_v22  ;;  %1101 = vst [vmem:[%s3353_s23] sm:$0xff] %v1100_v20  ;;  %vm2034_vm13 = vcmp.lt.s32.totalorder %v2033_v28, 0  ;;  %v1574_v23 = vsel %vm1562_vm7, %v1556_v36, %v1573_v13  ;;  %v3373_v49 = vmul.u32.u64.low %v3341_v0, %v1571_v50  ;;  %v3374_v4 = vmul.u32.u64.high %v3341_v0, %v1571_v50, %v3373_v49 }
  0xfa   : > { %v2149_v61 = vpop.eup %2148  ;;  %vm1307_vm14 = vcmp.eq.s32.totalorder %v1302_v37, 2  ;;  %v1386_v41 = vsel %vm2034_vm13, 0, %v2033_v28  ;;  %v1575_v38 = vsel %vm1561_vm0, %v1572_v30, %v1574_v23  ;;  %vm1303_vm8 = vcmp.lt.s32.totalorder %v1302_v37, 2 }
  0xfb   : > { %v2151_v53 = vpop.eup %2150  ;;  %v1201_v1 = vxor.u32 2147483648, %v2149_v61  ;;  %v1387_v46 = vsub.s32 32, %v1386_v41  ;;  %v1388_v8 = vshll.u32 %v3311_v43, %v1386_v41  ;;  %v1391_v6 = vsub.s32 4294967266, %v1386_v41 }
  0xfc   : > { %v1198_v60 = vxor.u32 2147483648, %v2151_v53  ;;  %v3380_v15 = vmul.u32.u64.low %v3341_v0, %v1575_v38  ;;  %v3381_v54 = vmul.u32.u64.high %v3341_v0, %v1575_v38, %v3380_v15  ;;  %v1583_v19 = vmul.u32 %v3341_v0, %v3319_v45 }
  0xfd   : > { %v1202_v21 = vsel %vm1200_vm3, %v1201_v1, %v2151_v53  ;;  %v1309_v36 = vsel %vm1307_vm14, %v1201_v1, %v2151_v53  ;;  %v1389_v39 = vshrl.u32 %v1371_v33, %v1387_v46  ;;  %v1392_v12 = vadd.s32 127, %v1391_v6 }
  0xfe   : > { %v1199_v17 = vsel %vm1197_vm12, %v2149_v61, %v1198_v60  ;;  %v1306_v31 = vsel %vm1304_vm1, %v2149_v61, %v1198_v60  ;;  %v1586_v26 = vadd.s32 1, %v3374_v4  ;;  %v1584_v55 = vadd.s32 %v3373_v49, %v3381_v54 }
  0xff   : > { %v1203_v51 = vsel %vm1196_vm2, %v1199_v17, %v1202_v21  ;;  %v1310_v56 = vsel %vm1303_vm8, %v1306_v31, %v1309_v36  ;;  %v1390_v40 = vor.u32 %v1389_v39, %v1388_v8  ;;  %v1393_v43 = vshll.u32 %v1392_v12, 23 }
 0x100   : > { %v1204_v59 = vsel %vm1194_vm5, nan, %v1203_v51  ;;  %v1311_v35 = vsel %vm1194_vm5, nan, %v1310_v56  ;;  %vm1585_vm6 = vc.u32 %v3381_v54, %v3373_v49  ;;  %v1401_v29 = vsub.s32 4, %v3289_v52 }
 0x101   : > { %v1205_v7 = vmul.f32 %v1204_v59, %v698_v24  ;;  %v1312_v45 = vmul.f32 %v1311_v35, %v698_v24  ;;  %v1394_v62 = vor.u32 4788187, %v1393_v43  ;;  %v1397_v16 = vcvt.s32.f32 %v1390_v40 }
 0x102   : > { %v1587_v47 = vsel %vm1585_vm6, %v1586_v26, %v3374_v4  ;;  %vm1317_vm10 = vcmp.lt.s32.totalorder %v3062_v5, 0  ;;  %vm1316_vm15 = vcmp.le.f32.partialorder %v1315_v32, 0.7853982  ;;  %v715_v28 = vstv %s1967_s13 }
 0x103   : > { %2025 = vst [vmem:[%s3347_s16 + $0x8] sm:$0xff] %v1205_v7  ;;  %2030 = vst [vmem:[%s3353_s23 + $0x8] sm:$0xff] %v1312_v45  ;;  %v1395_v3 = vand.u32 2147483647, %v1394_v62  ;;  %v1588_v44 = vadd.s32 %v1587_v47, %v1583_v19  ;;  %v1402_v11 = vsel %vm1317_vm10, %v1401_v29, %v3289_v52  ;;  %v716_v41 = vadd.f32 %v715_v28, %v2941_v57 }
 0x104   : > { %v1404_v2 = vsel %vm1316_vm15, 0, %v1402_v11  ;;  %vm1407_vm12 = vweird.f32 %v3062_v5  ;;  %vm1530_vm3 = vcmp.lt.s32.totalorder %v3138_v9, 0  ;;  %vm1529_vm13 = vcmp.le.f32.partialorder %v1528_v27, 0.7853982 }
 0x105   : > { %v1398_v10 = vmul.f32 %v1397_v16, %v1395_v3  ;;  %v1589_v34 = vadd.s32 536870912, %v1588_v44  ;;  %v1514_v37 = vadd.s32 3, %v1404_v2  ;;  %v1408_v20 = vand.u32 3, %v1404_v2 }
 0x106   : > { %v733_v62 = vstv %s1972_s18 }
 0x107   : > { %v1399_v14 = vxor.u32 2147483648, %v1398_v10  ;;  %v1590_v24 = vshrl.u32 %v1589_v34, 30  ;;  %v1515_v58 = vand.u32 3, %v1514_v37  ;;  %vm1409_vm7 = vcmp.lt.s32.totalorder %v1408_v20, 2 }
 0x108   : > { %vm1410_vm11 = vcmp.eq.s32.totalorder %v1408_v20, 0  ;;  %vm1413_vm0 = vcmp.eq.s32.totalorder %v1408_v20, 2  ;;  %v734_v3 = vadd.f32 %v733_v62, %v2963_v18 }
 0x109   : > { %v1400_v63 = vsel %vm1317_vm10, %v1399_v14, %v1398_v10  ;;  %v1591_v42 = vshll.u32 %v1590_v24, 30  ;;  %vm1520_vm9 = vcmp.eq.s32.totalorder %v1515_v58, 2  ;;  %vm1516_vm5 = vcmp.lt.s32.totalorder %v1515_v58, 2 }
 0x10a   : > { %v1403_v0 = vsel %vm1316_vm15, %v3062_v5, %v1400_v63  ;;  %vm1517_vm2 = vcmp.eq.s32.totalorder %v1515_v58, 0  ;;  %v1614_v19 = vsub.s32 4, %v1590_v24 }
 0x10b   : > { %2152 = vcosq.f32 %v1403_v0  ;;  %v1592_v25 = vsub.s32 %v1588_v44, %v1591_v42 }
 0x10c   : > { %2154 = vsinq.f32 %v1403_v0  ;;  %v1615_v56 = vsel %vm1530_vm3, %v1614_v19, %v1590_v24 }
 0x10d   : > { %v1594_v48 = vsub.s32 0, %v1592_v25  ;;  %v1617_v59 = vsel %vm1529_vm13, 0, %v1615_v56 }
 0x10e   : > { %v1727_v35 = vadd.s32 3, %v1617_v59 }
 0x10f   : > { %v2042_v22 = vmin.u32 %v1594_v48, %v1592_v25 }
 0x110   : > { %v1728_v7 = vand.u32 3, %v1727_v35 }
 0x111   : > { %v1596_v30 = vclz %v2042_v22 }
 0x112   : > { %vm1733_vm14 = vcmp.eq.s32.totalorder %v1728_v7, 2  ;;  %vm1730_vm6 = vcmp.eq.s32.totalorder %v1728_v7, 0  ;;  %vm1729_vm15 = vcmp.lt.s32.totalorder %v1728_v7, 2 }
 0x113   : > { %v2043_v32 = vadd.s32 4294967294, %v1596_v30 }
 0x115   : > { %v2153_v52 = vpop.eup %2152  ;;  %vm2044_vm4 = vcmp.lt.s32.totalorder %v2043_v32, 0 }
 0x116   : > { %v2155_v33 = vpop.eup %2154  ;;  %v1414_v50 = vxor.u32 2147483648, %v2153_v52  ;;  %v1599_v13 = vsel %vm2044_vm4, 0, %v2043_v32 }
 0x117   : > { %v1411_v23 = vxor.u32 2147483648, %v2155_v33  ;;  %v1600_v49 = vsub.s32 32, %v1599_v13  ;;  %v1601_v4 = vshll.u32 %v1592_v25, %v1599_v13  ;;  %v1604_v61 = vsub.s32 4294967266, %v1599_v13 }
 0x118   : > { %v1415_v38 = vsel %vm1413_vm0, %v1414_v50, %v2155_v33  ;;  %v1522_v53 = vsel %vm1520_vm9, %v1414_v50, %v2155_v33 }
 0x119   : > { %v1412_v1 = vsel %vm1410_vm11, %v2153_v52, %v1411_v23  ;;  %v1519_v46 = vsel %vm1517_vm2, %v2153_v52, %v1411_v23  ;;  %v1602_v8 = vshrl.u32 %v1584_v55, %v1600_v49  ;;  %v1605_v6 = vadd.s32 127, %v1604_v61 }
 0x11a   : > { %v1416_v60 = vsel %vm1409_vm7, %v1412_v1, %v1415_v38  ;;  %v1523_v15 = vsel %vm1516_vm5, %v1519_v46, %v1522_v53  ;;  %v1621_v55 = vand.u32 3, %v1617_v59  ;;  %vm1620_vm7 = vweird.f32 %v3138_v9 }
 0x11b   : > { %v1417_v54 = vsel %vm1407_vm12, nan, %v1416_v60  ;;  %v1524_v21 = vsel %vm1407_vm12, nan, %v1523_v15  ;;  %v1603_v36 = vor.u32 %v1602_v8, %v1601_v4  ;;  %v1606_v39 = vshll.u32 %v1605_v6, 23 }
 0x11c   : > { %v1418_v57 = vmul.f32 %v1417_v54, %v716_v41  ;;  %v1525_v12 = vmul.f32 %v1524_v21, %v716_v41  ;;  %vm1626_vm1 = vcmp.eq.s32.totalorder %v1621_v55, 2  ;;  %vm1623_vm8 = vcmp.eq.s32.totalorder %v1621_v55, 0 }
 0x11d   : > { %v1607_v5 = vor.u32 4788187, %v1606_v39  ;;  %v1610_v17 = vcvt.s32.f32 %v1603_v36  ;;  %vm1622_vm10 = vcmp.lt.s32.totalorder %v1621_v55, 2 }
 0x11e   : > { %2035 = vst [vmem:[%s3347_s16 + $0x10] sm:$0xff] %v1418_v57  ;;  %2040 = vst [vmem:[%s3353_s23 + $0x10] sm:$0xff] %v1525_v12 }
 0x11f   : > { %v1608_v31 = vand.u32 2147483647, %v1607_v5 }
 0x121   : > { %v1611_v26 = vmul.f32 %v1610_v17, %v1608_v31 }
 0x123   : > { %v1612_v51 = vxor.u32 2147483648, %v1611_v26 }
 0x125   : > { %v1613_v40 = vsel %vm1530_vm3, %v1612_v51, %v1611_v26 }
 0x126   : > { %v1616_v43 = vsel %vm1529_vm13, %v3138_v9, %v1613_v40 }
 0x127   : > { %2156 = vcosq.f32 %v1616_v43 }
 0x128   : > { %2158 = vsinq.f32 %v1616_v43 }
 0x131   : > { %v2157_v45 = vpop.eup %2156 }
 0x132   : > { %v2159_v16 = vpop.eup %2158  ;;  %v1627_v47 = vxor.u32 2147483648, %v2157_v45 }
 0x133   : > { %v1624_v27 = vxor.u32 2147483648, %v2159_v16 }
 0x134   : > { %v1628_v29 = vsel %vm1626_vm1, %v1627_v47, %v2159_v16  ;;  %v1735_v44 = vsel %vm1733_vm14, %v1627_v47, %v2159_v16 }
 0x135   : > { %v1625_v10 = vsel %vm1623_vm8, %v2157_v45, %v1624_v27  ;;  %v1732_v34 = vsel %vm1730_vm6, %v2157_v45, %v1624_v27 }
 0x136   : > { %v1629_v14 = vsel %vm1622_vm10, %v1625_v10, %v1628_v29  ;;  %v1736_v11 = vsel %vm1729_vm15, %v1732_v34, %v1735_v44 }
 0x137   : > { %v1630_v24 = vsel %vm1620_vm7, nan, %v1629_v14  ;;  %v1737_v63 = vsel %vm1620_vm7, nan, %v1736_v11 }
 0x138   : > { %v1631_v42 = vmul.f32 %v1630_v24, %v734_v3  ;;  %v1738_v0 = vmul.f32 %v1737_v63, %v734_v3 }
 0x13a   : > { %2045 = vst [vmem:[%s3347_s16 + $0x18] sm:$0xff] %v1631_v42  ;;  %2050 = vst [vmem:[%s3353_s23 + $0x18] sm:$0xff] %v1738_v0 }
 0x13b PF: > { %s18_s20 = sadd.s32 1, %s2220_s20   ;;  %s3471_s18 = smov %s2216_s19 }
 0x13c   : > { %p15_p4 = scmp.ge.s32.totalorder %s18_s20, 4   ;;  %s3472_s19 = smov %s3474_s22 }
 0x13e   :  { %17 = sbr.rel (!%p15_p4) target bundleno = 3 (0x3), region = 102 }
 0x145   :  { %1790 = vsyncpa [#allocation3], 1 }
 0x146   :  { %1792 = vsyncpa [#allocation3 + $0x1], 1 }
 0x147   :  { %1793 = vsyncpa [#allocation5], 1 }

</bundles_post_ra>
